<compile_context>
chip_gen: v7x
topology: tpu7x:2x2x1
jax: 0.10.0
libtpu: 0.0.40
codegen_flags: <defaults>
</compile_context>

<pallas_src>
import functools
import math

import jax
import jax.numpy as jnp
import numpy as np
from jax.experimental import pallas as pl
from jax.experimental.pallas import tpu as pltpu


def _dyt(x, alpha, weight, bias):
    # DyT: tanh(alpha * x) * weight + bias   (alpha: (1,1), weight/bias: (1,E))
    return jnp.tanh(alpha * x) * weight + bias


def cross_feature_attention_kernel(
    x_ref,
    wqkv_ref, bqkv_ref, wo3_ref, bo_ref,
    w1_ref, b1_ref, w2_ref, b2_ref,
    a1_ref, g1_ref, be1_ref, a2_ref, g2_ref, be2_ref,
    y_ref, attn_ref,
    q_scr, k_scr, v_scr,
    *, num_heads, head_dim, emb_dim, q_block,
):
    S = x_ref.shape[1]
    E, D, H, tq = emb_dim, head_dim, num_heads, q_block
    scale = 1.0 / math.sqrt(D)
    qi = pl.program_id(1)

    # ---- once per batch element: fused QKV projection -> head-major scratch ----
    @pl.when(qi == 0)
    def _setup():
        x_bf = x_ref[0].astype(jnp.bfloat16)                         # (S, E)
        qkv = (jnp.dot(x_bf, wqkv_ref[...],
                       preferred_element_type=jnp.float32)
               + bqkv_ref[...]).astype(jnp.bfloat16)                 # (S, 3E)
        # Head split happens ONCE per batch element (static lane slices here);
        # the per-query-block hot path below is fully head-batched.
        for h in range(H):
            lo = h * D
            q_scr[h] = qkv[:, lo:lo + D]
            k_scr[h] = qkv[:, E + lo:E + lo + D]
            v_scr[h] = qkv[:, 2 * E + lo:2 * E + lo + D]

    # ---- per query block: head-batched attention (no per-head loop) ------------
    row0 = pl.multiple_of(qi * tq, tq)
    q_blk = q_scr[:, pl.ds(row0, tq), :]                             # (H, tq, D) bf16
    k_all = k_scr[...]                                               # (H, S, D) bf16
    v_all = v_scr[...]                                               # (H, S, D) bf16

    s = jnp.einsum("hqd,hkd->hqk", q_blk, k_all,
                   preferred_element_type=jnp.float32) * scale       # (H, tq, S) f32
    m = jnp.max(s, axis=-1, keepdims=True)
    e = jnp.exp(s - m)
    p = e / jnp.sum(e, axis=-1, keepdims=True)                       # exact softmax
    attn_ref[0] = p.astype(attn_ref.dtype)                           # bf16 store

    p_bf = p.astype(jnp.bfloat16)
    ctx = jnp.einsum("hqk,hkd->hqd", p_bf, v_all,
                     preferred_element_type=jnp.float32)             # (H, tq, D) f32
    out_h = jnp.einsum("hqd,hde->hqe", ctx.astype(jnp.bfloat16), wo3_ref[...],
                       preferred_element_type=jnp.float32)           # (H, tq, E) f32
    attn_out = jnp.sum(out_h, axis=0) + bo_ref[...]                  # (tq, E) f32

    # ---- residual + DyT norm1 ---------------------------------------------------
    x_blk = x_ref[0, pl.ds(row0, tq), :]                             # (tq, E) f32
    h1 = _dyt(x_blk + attn_out, a1_ref[...], g1_ref[...], be1_ref[...])

    # ---- feed-forward (bf16 MXU, f32 accumulate) --------------------------------
    ff = (jnp.dot(h1.astype(jnp.bfloat16), w1_ref[...],
                  preferred_element_type=jnp.float32) + b1_ref[...])
    ff = jnp.maximum(ff, 0.0)
    ff = (jnp.dot(ff.astype(jnp.bfloat16), w2_ref[...],
                  preferred_element_type=jnp.float32) + b2_ref[...])

    # ---- residual + DyT norm2 ---------------------------------------------------
    h2 = _dyt(h1 + ff, a2_ref[...], g2_ref[...], be2_ref[...])
    y_ref[0] = h2.astype(y_ref.dtype)


def _vmem_limit_bytes():
    # Derive the scoped-VMEM limit from the chip (v5e/v6e: 128 MiB, v7x: 64 MiB)
    # instead of hardcoding; leave headroom for compiler-internal scratch.
    try:
        cap = int(pltpu.get_tpu_info().vmem_capacity_bytes)
    except Exception:
        cap = 0
    if cap <= 0:
        cap = 64 * 1024 * 1024
    return int(max(32 * 1024 * 1024, min(cap - 16 * 1024 * 1024, 100 * 1024 * 1024)))


def prepare_params(params, *, num_heads):
    """One-time host-side param prep (hoisted out of the forward per perf review):
    fused QKV weight, head-major Wo, bf16 casts for all MXU weights."""
    E = params["wq"].shape[0]
    H = num_heads
    D = E // H
    return {
        "wqkv": jnp.concatenate([params["wq"], params["wk"], params["wv"]],
                                axis=1).astype(jnp.bfloat16),        # (E, 3E)
        "bqkv": jnp.concatenate([params["bq"], params["bk"], params["bv"]],
                                axis=1),                             # (1, 3E) f32
        "wo3": params["wo"].reshape(H, D, E).astype(jnp.bfloat16),   # head-major
        "bo": params["bo"],
        "w1": params["w1"].astype(jnp.bfloat16),
        "b1": params["b1"],
        "w2": params["w2"].astype(jnp.bfloat16),
        "b2": params["b2"],
        "a1": params["a1"], "g1": params["g1"], "be1": params["be1"],
        "a2": params["a2"], "g2": params["g2"], "be2": params["be2"],
    }


def cross_feature_attention(x, prep, *, num_heads, q_block=None,
                            attn_dtype=jnp.bfloat16, single_buffer_consts=True):
    B, S, E = x.shape
    H = num_heads
    assert E % H == 0, "emb_dim must be divisible by num_heads"
    D = E // H
    if q_block is None:
        q_block = 128 if S % 128 == 0 else S
    assert S % q_block == 0 and (q_block % 8 == 0 or q_block == S)
    nq = S // q_block

    kern = functools.partial(cross_feature_attention_kernel,
                             num_heads=H, head_dim=D, emb_dim=E, q_block=q_block)

    def const_spec(shape):
        # Grid-invariant weight/bias block: fetched once across the whole grid;
        # single-buffered so it does not cost 2x VMEM (important on v7x).
        zeros = (0,) * len(shape)
        if single_buffer_consts:
            return pl.BlockSpec(shape, lambda b, q: zeros,
                                pipeline_mode=pl.Buffered(1))
        return pl.BlockSpec(shape, lambda b, q: zeros)

    in_specs = [
        pl.BlockSpec((1, S, E), lambda b, q: (b, 0, 0)),             # x (full seq)
        const_spec((E, 3 * E)), const_spec((1, 3 * E)),              # fused Wqkv, bqkv
        const_spec((H, D, E)), const_spec((1, E)),                   # Wo (head-major), bo
        const_spec((E, 4 * E)), const_spec((1, 4 * E)),              # ff W1, b1
        const_spec((4 * E, E)), const_spec((1, E)),                  # ff W2, b2
        const_spec((1, 1)), const_spec((1, E)), const_spec((1, E)),  # DyT1
        const_spec((1, 1)), const_spec((1, E)), const_spec((1, E)),  # DyT2
    ]
    out_specs = (
        pl.BlockSpec((1, q_block, E), lambda b, q: (b, q, 0)),
        pl.BlockSpec((1, H, q_block, S), lambda b, q: (b, 0, q, 0)),
    )
    out_shape = (
        jax.ShapeDtypeStruct((B, S, E), jnp.float32),
        jax.ShapeDtypeStruct((B, H, S, S), attn_dtype),
    )
    scratch_shapes = [
        pltpu.VMEM((H, S, D), jnp.bfloat16),   # Q, head-major, persists across qi
        pltpu.VMEM((H, S, D), jnp.bfloat16),   # K
        pltpu.VMEM((H, S, D), jnp.bfloat16),   # V
    ]

    fn = pl.pallas_call(
        kern,
        out_shape=out_shape,
        grid_spec=pltpu.PrefetchScalarGridSpec(
            num_scalar_prefetch=0,
            grid=(B, nq),
            in_specs=in_specs,
            out_specs=out_specs,
            scratch_shapes=scratch_shapes,
        ),
        compiler_params=pltpu.CompilerParams(
            # batch axis -> megacore-parallel; query axis reuses the per-batch
            # K/V scratch, so it must stay sequential ("arbitrary").
            dimension_semantics=("parallel", "arbitrary"),
            vmem_limit_bytes=_vmem_limit_bytes(),
        ),
    )
    return fn(
        x,
        prep["wqkv"], prep["bqkv"], prep["wo3"], prep["bo"],
        prep["w1"], prep["b1"], prep["w2"], prep["b2"],
        prep["a1"], prep["g1"], prep["be1"],
        prep["a2"], prep["g2"], prep["be2"],
    )


def reference_jax(x, params, *, num_heads):
    """Pure-JAX f32 reference of the PyTorch forward (eval mode)."""
    B, S, E = x.shape
    D = E // num_heads
    q = x @ params["wq"] + params["bq"]
    k = x @ params["wk"] + params["bk"]
    v = x @ params["wv"] + params["bv"]
    q = q.reshape(B, S, num_heads, D).transpose(0, 2, 1, 3)
    k = k.reshape(B, S, num_heads, D).transpose(0, 2, 1, 3)
    v = v.reshape(B, S, num_heads, D).transpose(0, 2, 1, 3)
    scores = jnp.einsum("bhqd,bhkd->bhqk", q, k) / math.sqrt(D)
    attn = jax.nn.softmax(scores, axis=-1)
    ctx = jnp.einsum("bhqk,bhkd->bhqd", attn, v)
    ctx = ctx.transpose(0, 2, 1, 3).reshape(B, S, E)
    attn_out = ctx @ params["wo"] + params["bo"]

    def dyt(z, a, g, b):
        return jnp.tanh(a * z) * g + b

    h1 = dyt(x + attn_out, params["a1"][0, 0], params["g1"][0], params["be1"][0])
    ff = jnp.maximum(h1 @ params["w1"] + params["b1"], 0.0)
    ff = ff @ params["w2"] + params["b2"]
    h2 = dyt(h1 + ff, params["a2"][0, 0], params["g2"][0], params["be2"][0])
    return h2, attn


def init_params(key, emb_dim):
    E = emb_dim
    ks = jax.random.split(key, 8)
    s = 1.0 / math.sqrt(E)
    params = {
        "wq": jax.random.uniform(ks[0], (E, E), jnp.float32, -s, s),
        "bq": jnp.zeros((1, E), jnp.float32),
        "wk": jax.random.uniform(ks[1], (E, E), jnp.float32, -s, s),
        "bk": jnp.zeros((1, E), jnp.float32),
        "wv": jax.random.uniform(ks[2], (E, E), jnp.float32, -s, s),
        "bv": jnp.zeros((1, E), jnp.float32),
        "wo": jax.random.uniform(ks[3], (E, E), jnp.float32, -s, s),
        "bo": jax.random.uniform(ks[4], (1, E), jnp.float32, -s, s),
        "w1": jax.random.uniform(ks[5], (E, 4 * E), jnp.float32, -s, s),
        "b1": jnp.zeros((1, 4 * E), jnp.float32),
        "w2": jax.random.uniform(ks[6], (4 * E, E), jnp.float32,
                                 -1.0 / math.sqrt(4 * E), 1.0 / math.sqrt(4 * E)),
        "b2": jnp.zeros((1, E), jnp.float32),
        # DyT params: alpha=0.5, weight=1, bias=0 (as in __init__)
        "a1": jnp.full((1, 1), 0.5, jnp.float32),
        "g1": jnp.ones((1, E), jnp.float32),
        "be1": jnp.zeros((1, E), jnp.float32),
        "a2": jnp.full((1, 1), 0.5, jnp.float32),
        "g2": jnp.ones((1, E), jnp.float32),
        "be2": jnp.zeros((1, E), jnp.float32),
    }
    return params


if __name__ == "__main__":
    B, S, E, H = 2, 8, 32, 4   # batch, seq_len, emb_dim, num_heads
    key = jax.random.PRNGKey(0)
    kx, kp = jax.random.split(key)
    x = jax.random.normal(kx, (B, S, E), jnp.float32)
    params = init_params(kp, E)
    prep = prepare_params(params, num_heads=H)   # one-time param prep

    try:
        fwd = jax.jit(functools.partial(cross_feature_attention, num_heads=H))
        y, attn = fwd(x, prep)
        y = jax.block_until_ready(y)
    except Exception:
        # pl.Buffered(1) single-buffered constant blocks unsupported on this
        # jax/libtpu build -- fall back to default double buffering.
        fwd = jax.jit(functools.partial(cross_feature_attention, num_heads=H,
                                        single_buffer_consts=False))
        y, attn = fwd(x, prep)
        y = jax.block_until_ready(y)
    attn = jax.block_until_ready(attn)

    # f32 reference; kernel does bf16 MXU math with f32 accumulation and emits
    # attention probs in bf16, so tolerances are bf16-level.
    y_ref, attn_ref = reference_jax(x, params, num_heads=H)
    np.testing.assert_allclose(np.asarray(y), np.asarray(y_ref),
                               atol=5e-2, rtol=5e-2)
    np.testing.assert_allclose(np.asarray(attn.astype(jnp.float32)),
                               np.asarray(attn_ref), atol=2e-2, rtol=2e-2)

    print("KERNEL_OK")
</pallas_src>

<mosaic_0001>
module attributes {stable_mosaic.version = 11 : i64} {
  func.func @cross_feature_attention_kernel(%arg0: i32, %arg1: i32, %arg2: memref<1x8x32xf32, #tpu.memory_space<vmem>>, %arg3: memref<32x96xbf16, #tpu.memory_space<vmem>>, %arg4: memref<1x96xf32, #tpu.memory_space<vmem>>, %arg5: memref<4x8x32xbf16, #tpu.memory_space<vmem>>, %arg6: memref<1x32xf32, #tpu.memory_space<vmem>>, %arg7: memref<32x128xbf16, #tpu.memory_space<vmem>>, %arg8: memref<1x128xf32, #tpu.memory_space<vmem>>, %arg9: memref<128x32xbf16, #tpu.memory_space<vmem>>, %arg10: memref<1x32xf32, #tpu.memory_space<vmem>>, %arg11: memref<1x1xf32, #tpu.memory_space<vmem>>, %arg12: memref<1x32xf32, #tpu.memory_space<vmem>>, %arg13: memref<1x32xf32, #tpu.memory_space<vmem>>, %arg14: memref<1x1xf32, #tpu.memory_space<vmem>>, %arg15: memref<1x32xf32, #tpu.memory_space<vmem>>, %arg16: memref<1x32xf32, #tpu.memory_space<vmem>>, %arg17: memref<1x8x32xf32, #tpu.memory_space<vmem>>, %arg18: memref<1x4x8x8xbf16, #tpu.memory_space<vmem>>, %arg19: memref<4x8x8xbf16, #tpu.memory_space<vmem>>, %arg20: memref<4x8x8xbf16, #tpu.memory_space<vmem>>, %arg21: memref<4x8x8xbf16, #tpu.memory_space<vmem>>) attributes {dimension_semantics = [#tpu.dimension_semantics<parallel>, #tpu.dimension_semantics<arbitrary>], iteration_bounds = array<i64: 2, 1>, scalar_prefetch = 0 : i64, scratch_operands = 3 : i64, tpu.core_type = #tpu.core_type<tc>, window_params = [{transform_indices = @transform_0, window_bounds = array<i64: 1, 8, 32>}, {pipeline_mode = #tpu.pipeline_mode<synchronous>, transform_indices = @transform_1, window_bounds = array<i64: 32, 96>}, {pipeline_mode = #tpu.pipeline_mode<synchronous>, transform_indices = @transform_2, window_bounds = array<i64: 1, 96>}, {pipeline_mode = #tpu.pipeline_mode<synchronous>, transform_indices = @transform_3, window_bounds = array<i64: 4, 8, 32>}, {pipeline_mode = #tpu.pipeline_mode<synchronous>, transform_indices = @transform_4, window_bounds = array<i64: 1, 32>}, {pipeline_mode = #tpu.pipeline_mode<synchronous>, transform_indices = @transform_5, window_bounds = array<i64: 32, 128>}, {pipeline_mode = #tpu.pipeline_mode<synchronous>, transform_indices = @transform_6, window_bounds = array<i64: 1, 128>}, {pipeline_mode = #tpu.pipeline_mode<synchronous>, transform_indices = @transform_7, window_bounds = array<i64: 128, 32>}, {pipeline_mode = #tpu.pipeline_mode<synchronous>, transform_indices = @transform_8, window_bounds = array<i64: 1, 32>}, {pipeline_mode = #tpu.pipeline_mode<synchronous>, transform_indices = @transform_9, window_bounds = array<i64: 1, 1>}, {pipeline_mode = #tpu.pipeline_mode<synchronous>, transform_indices = @transform_10, window_bounds = array<i64: 1, 32>}, {pipeline_mode = #tpu.pipeline_mode<synchronous>, transform_indices = @transform_11, window_bounds = array<i64: 1, 32>}, {pipeline_mode = #tpu.pipeline_mode<synchronous>, transform_indices = @transform_12, window_bounds = array<i64: 1, 1>}, {pipeline_mode = #tpu.pipeline_mode<synchronous>, transform_indices = @transform_13, window_bounds = array<i64: 1, 32>}, {pipeline_mode = #tpu.pipeline_mode<synchronous>, transform_indices = @transform_14, window_bounds = array<i64: 1, 32>}, {transform_indices = @transform_15, window_bounds = array<i64: 1, 8, 32>}, {transform_indices = @transform_16, window_bounds = array<i64: 1, 4, 8, 8>}]} {
    %c0_i32 = arith.constant 0 : i32
    %0 = arith.cmpi eq, %arg1, %c0_i32 : i32
    %1 = arith.extui %0 : i1 to i32
    %c0_i32_0 = arith.constant 0 : i32
    %2 = arith.cmpi ne, %1, %c0_i32_0 : i32
    scf.if %2 {
      %c0_51 = arith.constant 0 : index
      %c0_52 = arith.constant 0 : index
      %c0_53 = arith.constant 0 : index
      %76 = vector.load %arg2[%c0_51, %c0_52, %c0_53] : memref<1x8x32xf32, #tpu.memory_space<vmem>>, vector<1x8x32xf32>
      %77 = vector.shape_cast %76 : vector<1x8x32xf32> to vector<8x32xf32>
      %78 = arith.truncf %77 : vector<8x32xf32> to vector<8x32xbf16>
      %c0_54 = arith.constant 0 : index
      %c0_55 = arith.constant 0 : index
      %79 = vector.load %arg3[%c0_54, %c0_55] : memref<32x96xbf16, #tpu.memory_space<vmem>>, vector<32x96xbf16>
      %cst_56 = arith.constant dense<0.000000e+00> : vector<8x96xf32>
      %80 = tpu.matmul %78, %79, %cst_56 {dimension_numbers = #tpu.dot_dimension_numbers<[1], [0], [0], [1], [0, 0, 1, 1], [], []>} : vector<8x32xbf16>, vector<32x96xbf16>, vector<8x96xf32> -> vector<8x96xf32>
      %c0_57 = arith.constant 0 : index
      %c0_58 = arith.constant 0 : index
      %81 = vector.load %arg4[%c0_57, %c0_58] : memref<1x96xf32, #tpu.memory_space<vmem>>, vector<1x96xf32>
      %82 = vector.broadcast %81 : vector<1x96xf32> to vector<8x96xf32>
      %83 = arith.addf %80, %82 : vector<8x96xf32>
      %84 = arith.truncf %83 : vector<8x96xf32> to vector<8x96xbf16>
      %85 = vector.extract_strided_slice %84 {offsets = [0, 0], sizes = [8, 8], strides = [1, 1]} : vector<8x96xbf16> to vector<8x8xbf16>
      %c0_59 = arith.constant 0 : index
      %c0_60 = arith.constant 0 : index
      %c0_61 = arith.constant 0 : index
      %86 = vector.load %arg19[%c0_59, %c0_60, %c0_61] : memref<4x8x8xbf16, #tpu.memory_space<vmem>>, vector<1x8x8xbf16>
      %87 = vector.shape_cast %86 : vector<1x8x8xbf16> to vector<8x8xbf16>
      %88 = vector.shape_cast %85 : vector<8x8xbf16> to vector<1x8x8xbf16>
      tpu.vector_store %arg19[%c0_59, %c0_60, %c0_61], %88 {strides = array<i32>} : memref<4x8x8xbf16, #tpu.memory_space<vmem>>, vector<1x8x8xbf16>,
      %89 = vector.extract_strided_slice %84 {offsets = [0, 32], sizes = [8, 8], strides = [1, 1]} : vector<8x96xbf16> to vector<8x8xbf16>
      %c0_62 = arith.constant 0 : index
      %c0_63 = arith.constant 0 : index
      %c0_64 = arith.constant 0 : index
      %90 = vector.load %arg20[%c0_62, %c0_63, %c0_64] : memref<4x8x8xbf16, #tpu.memory_space<vmem>>, vector<1x8x8xbf16>
      %91 = vector.shape_cast %90 : vector<1x8x8xbf16> to vector<8x8xbf16>
      %92 = vector.shape_cast %89 : vector<8x8xbf16> to vector<1x8x8xbf16>
      tpu.vector_store %arg20[%c0_62, %c0_63, %c0_64], %92 {strides = array<i32>} : memref<4x8x8xbf16, #tpu.memory_space<vmem>>, vector<1x8x8xbf16>,
      %93 = vector.extract_strided_slice %84 {offsets = [0, 64], sizes = [8, 8], strides = [1, 1]} : vector<8x96xbf16> to vector<8x8xbf16>
      %c0_65 = arith.constant 0 : index
      %c0_66 = arith.constant 0 : index
      %c0_67 = arith.constant 0 : index
      %94 = vector.load %arg21[%c0_65, %c0_66, %c0_67] : memref<4x8x8xbf16, #tpu.memory_space<vmem>>, vector<1x8x8xbf16>
      %95 = vector.shape_cast %94 : vector<1x8x8xbf16> to vector<8x8xbf16>
      %96 = vector.shape_cast %93 : vector<8x8xbf16> to vector<1x8x8xbf16>
      tpu.vector_store %arg21[%c0_65, %c0_66, %c0_67], %96 {strides = array<i32>} : memref<4x8x8xbf16, #tpu.memory_space<vmem>>, vector<1x8x8xbf16>,
      %97 = vector.extract_strided_slice %84 {offsets = [0, 8], sizes = [8, 8], strides = [1, 1]} : vector<8x96xbf16> to vector<8x8xbf16>
      %c1 = arith.constant 1 : index
      %c0_68 = arith.constant 0 : index
      %c0_69 = arith.constant 0 : index
      %98 = vector.load %arg19[%c1, %c0_68, %c0_69] : memref<4x8x8xbf16, #tpu.memory_space<vmem>>, vector<1x8x8xbf16>
      %99 = vector.shape_cast %98 : vector<1x8x8xbf16> to vector<8x8xbf16>
      %100 = vector.shape_cast %97 : vector<8x8xbf16> to vector<1x8x8xbf16>
      tpu.vector_store %arg19[%c1, %c0_68, %c0_69], %100 {strides = array<i32>} : memref<4x8x8xbf16, #tpu.memory_space<vmem>>, vector<1x8x8xbf16>,
      %101 = vector.extract_strided_slice %84 {offsets = [0, 40], sizes = [8, 8], strides = [1, 1]} : vector<8x96xbf16> to vector<8x8xbf16>
      %c1_70 = arith.constant 1 : index
      %c0_71 = arith.constant 0 : index
      %c0_72 = arith.constant 0 : index
      %102 = vector.load %arg20[%c1_70, %c0_71, %c0_72] : memref<4x8x8xbf16, #tpu.memory_space<vmem>>, vector<1x8x8xbf16>
      %103 = vector.shape_cast %102 : vector<1x8x8xbf16> to vector<8x8xbf16>
      %104 = vector.shape_cast %101 : vector<8x8xbf16> to vector<1x8x8xbf16>
      tpu.vector_store %arg20[%c1_70, %c0_71, %c0_72], %104 {strides = array<i32>} : memref<4x8x8xbf16, #tpu.memory_space<vmem>>, vector<1x8x8xbf16>,
      %105 = vector.extract_strided_slice %84 {offsets = [0, 72], sizes = [8, 8], strides = [1, 1]} : vector<8x96xbf16> to vector<8x8xbf16>
      %c1_73 = arith.constant 1 : index
      %c0_74 = arith.constant 0 : index
      %c0_75 = arith.constant 0 : index
      %106 = vector.load %arg21[%c1_73, %c0_74, %c0_75] : memref<4x8x8xbf16, #tpu.memory_space<vmem>>, vector<1x8x8xbf16>
      %107 = vector.shape_cast %106 : vector<1x8x8xbf16> to vector<8x8xbf16>
      %108 = vector.shape_cast %105 : vector<8x8xbf16> to vector<1x8x8xbf16>
      tpu.vector_store %arg21[%c1_73, %c0_74, %c0_75], %108 {strides = array<i32>} : memref<4x8x8xbf16, #tpu.memory_space<vmem>>, vector<1x8x8xbf16>,
      %109 = vector.extract_strided_slice %84 {offsets = [0, 16], sizes = [8, 8], strides = [1, 1]} : vector<8x96xbf16> to vector<8x8xbf16>
      %c2 = arith.constant 2 : index
      %c0_76 = arith.constant 0 : index
      %c0_77 = arith.constant 0 : index
      %110 = vector.load %arg19[%c2, %c0_76, %c0_77] : memref<4x8x8xbf16, #tpu.memory_space<vmem>>, vector<1x8x8xbf16>
      %111 = vector.shape_cast %110 : vector<1x8x8xbf16> to vector<8x8xbf16>
      %112 = vector.shape_cast %109 : vector<8x8xbf16> to vector<1x8x8xbf16>
      tpu.vector_store %arg19[%c2, %c0_76, %c0_77], %112 {strides = array<i32>} : memref<4x8x8xbf16, #tpu.memory_space<vmem>>, vector<1x8x8xbf16>,
      %113 = vector.extract_strided_slice %84 {offsets = [0, 48], sizes = [8, 8], strides = [1, 1]} : vector<8x96xbf16> to vector<8x8xbf16>
      %c2_78 = arith.constant 2 : index
      %c0_79 = arith.constant 0 : index
      %c0_80 = arith.constant 0 : index
      %114 = vector.load %arg20[%c2_78, %c0_79, %c0_80] : memref<4x8x8xbf16, #tpu.memory_space<vmem>>, vector<1x8x8xbf16>
      %115 = vector.shape_cast %114 : vector<1x8x8xbf16> to vector<8x8xbf16>
      %116 = vector.shape_cast %113 : vector<8x8xbf16> to vector<1x8x8xbf16>
      tpu.vector_store %arg20[%c2_78, %c0_79, %c0_80], %116 {strides = array<i32>} : memref<4x8x8xbf16, #tpu.memory_space<vmem>>, vector<1x8x8xbf16>,
      %117 = vector.extract_strided_slice %84 {offsets = [0, 80], sizes = [8, 8], strides = [1, 1]} : vector<8x96xbf16> to vector<8x8xbf16>
      %c2_81 = arith.constant 2 : index
      %c0_82 = arith.constant 0 : index
      %c0_83 = arith.constant 0 : index
      %118 = vector.load %arg21[%c2_81, %c0_82, %c0_83] : memref<4x8x8xbf16, #tpu.memory_space<vmem>>, vector<1x8x8xbf16>
      %119 = vector.shape_cast %118 : vector<1x8x8xbf16> to vector<8x8xbf16>
      %120 = vector.shape_cast %117 : vector<8x8xbf16> to vector<1x8x8xbf16>
      tpu.vector_store %arg21[%c2_81, %c0_82, %c0_83], %120 {strides = array<i32>} : memref<4x8x8xbf16, #tpu.memory_space<vmem>>, vector<1x8x8xbf16>,
      %121 = vector.extract_strided_slice %84 {offsets = [0, 24], sizes = [8, 8], strides = [1, 1]} : vector<8x96xbf16> to vector<8x8xbf16>
      %c3 = arith.constant 3 : index
      %c0_84 = arith.constant 0 : index
      %c0_85 = arith.constant 0 : index
      %122 = vector.load %arg19[%c3, %c0_84, %c0_85] : memref<4x8x8xbf16, #tpu.memory_space<vmem>>, vector<1x8x8xbf16>
      %123 = vector.shape_cast %122 : vector<1x8x8xbf16> to vector<8x8xbf16>
      %124 = vector.shape_cast %121 : vector<8x8xbf16> to vector<1x8x8xbf16>
      tpu.vector_store %arg19[%c3, %c0_84, %c0_85], %124 {strides = array<i32>} : memref<4x8x8xbf16, #tpu.memory_space<vmem>>, vector<1x8x8xbf16>,
      %125 = vector.extract_strided_slice %84 {offsets = [0, 56], sizes = [8, 8], strides = [1, 1]} : vector<8x96xbf16> to vector<8x8xbf16>
      %c3_86 = arith.constant 3 : index
      %c0_87 = arith.constant 0 : index
      %c0_88 = arith.constant 0 : index
      %126 = vector.load %arg20[%c3_86, %c0_87, %c0_88] : memref<4x8x8xbf16, #tpu.memory_space<vmem>>, vector<1x8x8xbf16>
      %127 = vector.shape_cast %126 : vector<1x8x8xbf16> to vector<8x8xbf16>
      %128 = vector.shape_cast %125 : vector<8x8xbf16> to vector<1x8x8xbf16>
      tpu.vector_store %arg20[%c3_86, %c0_87, %c0_88], %128 {strides = array<i32>} : memref<4x8x8xbf16, #tpu.memory_space<vmem>>, vector<1x8x8xbf16>,
      %129 = vector.extract_strided_slice %84 {offsets = [0, 88], sizes = [8, 8], strides = [1, 1]} : vector<8x96xbf16> to vector<8x8xbf16>
      %c3_89 = arith.constant 3 : index
      %c0_90 = arith.constant 0 : index
      %c0_91 = arith.constant 0 : index
      %130 = vector.load %arg21[%c3_89, %c0_90, %c0_91] : memref<4x8x8xbf16, #tpu.memory_space<vmem>>, vector<1x8x8xbf16>
      %131 = vector.shape_cast %130 : vector<1x8x8xbf16> to vector<8x8xbf16>
      %132 = vector.shape_cast %129 : vector<8x8xbf16> to vector<1x8x8xbf16>
      tpu.vector_store %arg21[%c3_89, %c0_90, %c0_91], %132 {strides = array<i32>} : memref<4x8x8xbf16, #tpu.memory_space<vmem>>, vector<1x8x8xbf16>,
    } else {
    }
    %c8_i32 = arith.constant 8 : i32
    %3 = arith.muli %arg1, %c8_i32 : i32
    %4 = tpu.assume_multiple %3, 8 : i32
    %c0 = arith.constant 0 : index
    %5 = arith.index_cast %4 : i32 to index
    %c0_1 = arith.constant 0 : index
    %6 = vector.load %arg19[%c0, %5, %c0_1] : memref<4x8x8xbf16, #tpu.memory_space<vmem>>, vector<4x8x8xbf16>
    %c0_2 = arith.constant 0 : index
    %c0_3 = arith.constant 0 : index
    %c0_4 = arith.constant 0 : index
    %7 = vector.load %arg20[%c0_2, %c0_3, %c0_4] : memref<4x8x8xbf16, #tpu.memory_space<vmem>>, vector<4x8x8xbf16>
    %c0_5 = arith.constant 0 : index
    %c0_6 = arith.constant 0 : index
    %c0_7 = arith.constant 0 : index
    %8 = vector.load %arg21[%c0_5, %c0_6, %c0_7] : memref<4x8x8xbf16, #tpu.memory_space<vmem>>, vector<4x8x8xbf16>
    "tpu.trace_start"() <{level = 10 : i32, message = "hqd,hkd->hqk"}> : () -> ()
    %cst = arith.constant dense<0.000000e+00> : vector<4x8x8xf32>
    %9 = tpu.matmul %6, %7, %cst {dimension_numbers = #tpu.dot_dimension_numbers<[2], [2], [1], [1], [0, 0, 0, 1, 1, 1], [0], [0]>} : vector<4x8x8xbf16>, vector<4x8x8xbf16>, vector<4x8x8xf32> -> vector<4x8x8xf32>
    "tpu.trace_stop"() : () -> ()
    %cst_8 = arith.constant 0.353553385 : f32
    %10 = vector.broadcast %cst_8 : f32 to vector<4x8x8xf32>
    %11 = arith.mulf %9, %10 : vector<4x8x8xf32>
    %cst_9 = arith.constant dense<0xFF800000> : vector<4x8xf32>
    %12 = vector.multi_reduction <maximumf>, %11, %cst_9 [2] : vector<4x8x8xf32> to vector<4x8xf32>
    %13 = vector.shape_cast %12 : vector<4x8xf32> to vector<4x8x1xf32>
    %14 = vector.broadcast %13 : vector<4x8x1xf32> to vector<4x8x8xf32>
    %15 = arith.subf %11, %14 : vector<4x8x8xf32>
    %16 = math.exp %15 : vector<4x8x8xf32>
    %cst_10 = arith.constant dense<0.000000e+00> : vector<4x8xf32>
    %17 = vector.multi_reduction <add>, %16, %cst_10 [2] : vector<4x8x8xf32> to vector<4x8xf32>
    %18 = vector.shape_cast %17 : vector<4x8xf32> to vector<4x8x1xf32>
    %19 = vector.broadcast %18 : vector<4x8x1xf32> to vector<4x8x8xf32>
    %20 = arith.divf %16, %19 : vector<4x8x8xf32>
    %21 = arith.truncf %20 : vector<4x8x8xf32> to vector<4x8x8xbf16>
    %c0_11 = arith.constant 0 : index
    %c0_12 = arith.constant 0 : index
    %c0_13 = arith.constant 0 : index
    %c0_14 = arith.constant 0 : index
    %22 = vector.load %arg18[%c0_11, %c0_12, %c0_13, %c0_14] : memref<1x4x8x8xbf16, #tpu.memory_space<vmem>>, vector<1x4x8x8xbf16>
    %23 = vector.shape_cast %22 : vector<1x4x8x8xbf16> to vector<4x8x8xbf16>
    %24 = vector.shape_cast %21 : vector<4x8x8xbf16> to vector<1x4x8x8xbf16>
    tpu.vector_store %arg18[%c0_11, %c0_12, %c0_13, %c0_14], %24 {strides = array<i32>} : memref<1x4x8x8xbf16, #tpu.memory_space<vmem>>, vector<1x4x8x8xbf16>,
    %25 = arith.truncf %20 : vector<4x8x8xf32> to vector<4x8x8xbf16>
    "tpu.trace_start"() <{level = 10 : i32, message = "hqk,hkd->hqd"}> : () -> ()
    %cst_15 = arith.constant dense<0.000000e+00> : vector<4x8x8xf32>
    %26 = tpu.matmul %25, %8, %cst_15 {dimension_numbers = #tpu.dot_dimension_numbers<[2], [1], [1], [2], [0, 0, 0, 1, 1, 2], [0], [0]>} : vector<4x8x8xbf16>, vector<4x8x8xbf16>, vector<4x8x8xf32> -> vector<4x8x8xf32>
    "tpu.trace_stop"() : () -> ()
    %27 = arith.truncf %26 : vector<4x8x8xf32> to vector<4x8x8xbf16>
    %c0_16 = arith.constant 0 : index
    %c0_17 = arith.constant 0 : index
    %c0_18 = arith.constant 0 : index
    %28 = vector.load %arg5[%c0_16, %c0_17, %c0_18] : memref<4x8x32xbf16, #tpu.memory_space<vmem>>, vector<4x8x32xbf16>
    "tpu.trace_start"() <{level = 10 : i32, message = "hqd,hde->hqe"}> : () -> ()
    %cst_19 = arith.constant dense<0.000000e+00> : vector<4x8x32xf32>
    %29 = tpu.matmul %27, %28, %cst_19 {dimension_numbers = #tpu.dot_dimension_numbers<[2], [1], [1], [2], [0, 0, 0, 1, 1, 2], [0], [0]>} : vector<4x8x8xbf16>, vector<4x8x32xbf16>, vector<4x8x32xf32> -> vector<4x8x32xf32>
    "tpu.trace_stop"() : () -> ()
    %cst_20 = arith.constant dense<0.000000e+00> : vector<8x32xf32>
    %30 = vector.multi_reduction <add>, %29, %cst_20 [0] : vector<4x8x32xf32> to vector<8x32xf32>
    %c0_21 = arith.constant 0 : index
    %c0_22 = arith.constant 0 : index
    %31 = vector.load %arg6[%c0_21, %c0_22] : memref<1x32xf32, #tpu.memory_space<vmem>>, vector<1x32xf32>
    %32 = vector.broadcast %31 : vector<1x32xf32> to vector<8x32xf32>
    %33 = arith.addf %30, %32 : vector<8x32xf32>
    %c0_23 = arith.constant 0 : index
    %34 = arith.index_cast %4 : i32 to index
    %c0_24 = arith.constant 0 : index
    %35 = vector.load %arg2[%c0_23, %34, %c0_24] : memref<1x8x32xf32, #tpu.memory_space<vmem>>, vector<1x8x32xf32>
    %36 = vector.shape_cast %35 : vector<1x8x32xf32> to vector<8x32xf32>
    %37 = arith.addf %36, %33 : vector<8x32xf32>
    %c0_25 = arith.constant 0 : index
    %c0_26 = arith.constant 0 : index
    %38 = vector.load %arg11[%c0_25, %c0_26] : memref<1x1xf32, #tpu.memory_space<vmem>>, vector<1x1xf32>
    %c0_27 = arith.constant 0 : index
    %c0_28 = arith.constant 0 : index
    %39 = vector.load %arg12[%c0_27, %c0_28] : memref<1x32xf32, #tpu.memory_space<vmem>>, vector<1x32xf32>
    %c0_29 = arith.constant 0 : index
    %c0_30 = arith.constant 0 : index
    %40 = vector.load %arg13[%c0_29, %c0_30] : memref<1x32xf32, #tpu.memory_space<vmem>>, vector<1x32xf32>
    %41 = vector.broadcast %38 : vector<1x1xf32> to vector<8x32xf32>
    %42 = arith.mulf %41, %37 : vector<8x32xf32>
    %43 = math.tanh %42 : vector<8x32xf32>
    %44 = vector.broadcast %39 : vector<1x32xf32> to vector<8x32xf32>
    %45 = arith.mulf %43, %44 : vector<8x32xf32>
    %46 = vector.broadcast %40 : vector<1x32xf32> to vector<8x32xf32>
    %47 = arith.addf %45, %46 : vector<8x32xf32>
    %48 = arith.truncf %47 : vector<8x32xf32> to vector<8x32xbf16>
    %c0_31 = arith.constant 0 : index
    %c0_32 = arith.constant 0 : index
    %49 = vector.load %arg7[%c0_31, %c0_32] : memref<32x128xbf16, #tpu.memory_space<vmem>>, vector<32x128xbf16>
    %cst_33 = arith.constant dense<0.000000e+00> : vector<8x128xf32>
    %50 = tpu.matmul %48, %49, %cst_33 {dimension_numbers = #tpu.dot_dimension_numbers<[1], [0], [0], [1], [0, 0, 1, 1], [], []>} : vector<8x32xbf16>, vector<32x128xbf16>, vector<8x128xf32> -> vector<8x128xf32>
    %c0_34 = arith.constant 0 : index
    %c0_35 = arith.constant 0 : index
    %51 = vector.load %arg8[%c0_34, %c0_35] : memref<1x128xf32, #tpu.memory_space<vmem>>, vector<1x128xf32>
    %52 = vector.broadcast %51 : vector<1x128xf32> to vector<8x128xf32>
    %53 = arith.addf %50, %52 : vector<8x128xf32>
    %cst_36 = arith.constant 0.000000e+00 : f32
    %54 = vector.broadcast %cst_36 : f32 to vector<8x128xf32>
    %55 = arith.maximumf %53, %54 : vector<8x128xf32>
    %56 = arith.truncf %55 : vector<8x128xf32> to vector<8x128xbf16>
    %c0_37 = arith.constant 0 : index
    %c0_38 = arith.constant 0 : index
    %57 = vector.load %arg9[%c0_37, %c0_38] : memref<128x32xbf16, #tpu.memory_space<vmem>>, vector<128x32xbf16>
    %cst_39 = arith.constant dense<0.000000e+00> : vector<8x32xf32>
    %58 = tpu.matmul %56, %57, %cst_39 {dimension_numbers = #tpu.dot_dimension_numbers<[1], [0], [0], [1], [0, 0, 1, 1], [], []>} : vector<8x128xbf16>, vector<128x32xbf16>, vector<8x32xf32> -> vector<8x32xf32>
    %c0_40 = arith.constant 0 : index
    %c0_41 = arith.constant 0 : index
    %59 = vector.load %arg10[%c0_40, %c0_41] : memref<1x32xf32, #tpu.memory_space<vmem>>, vector<1x32xf32>
    %60 = vector.broadcast %59 : vector<1x32xf32> to vector<8x32xf32>
    %61 = arith.addf %58, %60 : vector<8x32xf32>
    %62 = arith.addf %47, %61 : vector<8x32xf32>
    %c0_42 = arith.constant 0 : index
    %c0_43 = arith.constant 0 : index
    %63 = vector.load %arg14[%c0_42, %c0_43] : memref<1x1xf32, #tpu.memory_space<vmem>>, vector<1x1xf32>
    %c0_44 = arith.constant 0 : index
    %c0_45 = arith.constant 0 : index
    %64 = vector.load %arg15[%c0_44, %c0_45] : memref<1x32xf32, #tpu.memory_space<vmem>>, vector<1x32xf32>
    %c0_46 = arith.constant 0 : index
    %c0_47 = arith.constant 0 : index
    %65 = vector.load %arg16[%c0_46, %c0_47] : memref<1x32xf32, #tpu.memory_space<vmem>>, vector<1x32xf32>
    %66 = vector.broadcast %63 : vector<1x1xf32> to vector<8x32xf32>
    %67 = arith.mulf %66, %62 : vector<8x32xf32>
    %68 = math.tanh %67 : vector<8x32xf32>
    %69 = vector.broadcast %64 : vector<1x32xf32> to vector<8x32xf32>
    %70 = arith.mulf %68, %69 : vector<8x32xf32>
    %71 = vector.broadcast %65 : vector<1x32xf32> to vector<8x32xf32>
    %72 = arith.addf %70, %71 : vector<8x32xf32>
    %c0_48 = arith.constant 0 : index
    %c0_49 = arith.constant 0 : index
    %c0_50 = arith.constant 0 : index
    %73 = vector.load %arg17[%c0_48, %c0_49, %c0_50] : memref<1x8x32xf32, #tpu.memory_space<vmem>>, vector<1x8x32xf32>
    %74 = vector.shape_cast %73 : vector<1x8x32xf32> to vector<8x32xf32>
    %75 = vector.shape_cast %72 : vector<8x32xf32> to vector<1x8x32xf32>
    tpu.vector_store %arg17[%c0_48, %c0_49, %c0_50], %75 {strides = array<i32>} : memref<1x8x32xf32, #tpu.memory_space<vmem>>, vector<1x8x32xf32>,
    return
  }
  func.func @transform_0(%arg0: i32, %arg1: i32) -> (i32, i32, i32) {
    %c0_i32 = arith.constant 0 : i32
    %c0_i32_0 = arith.constant 0 : i32
    %c0_i32_1 = arith.constant 0 : i32
    return %arg0, %c0_i32, %c0_i32_0 : i32, i32, i32
  }
  func.func @transform_1(%arg0: i32, %arg1: i32) -> (i32, i32) {
    %c0_i32 = arith.constant 0 : i32
    %c0_i32_0 = arith.constant 0 : i32
    %c0_i32_1 = arith.constant 0 : i32
    return %c0_i32, %c0_i32_0 : i32, i32
  }
  func.func @transform_2(%arg0: i32, %arg1: i32) -> (i32, i32) {
    %c0_i32 = arith.constant 0 : i32
    %c0_i32_0 = arith.constant 0 : i32
    %c0_i32_1 = arith.constant 0 : i32
    return %c0_i32, %c0_i32_0 : i32, i32
  }
  func.func @transform_3(%arg0: i32, %arg1: i32) -> (i32, i32, i32) {
    %c0_i32 = arith.constant 0 : i32
    %c0_i32_0 = arith.constant 0 : i32
    %c0_i32_1 = arith.constant 0 : i32
    %c0_i32_2 = arith.constant 0 : i32
    return %c0_i32, %c0_i32_0, %c0_i32_1 : i32, i32, i32
  }
  func.func @transform_4(%arg0: i32, %arg1: i32) -> (i32, i32) {
    %c0_i32 = arith.constant 0 : i32
    %c0_i32_0 = arith.constant 0 : i32
    %c0_i32_1 = arith.constant 0 : i32
    return %c0_i32, %c0_i32_0 : i32, i32
  }
  func.func @transform_5(%arg0: i32, %arg1: i32) -> (i32, i32) {
    %c0_i32 = arith.constant 0 : i32
    %c0_i32_0 = arith.constant 0 : i32
    %c0_i32_1 = arith.constant 0 : i32
    return %c0_i32, %c0_i32_0 : i32, i32
  }
  func.func @transform_6(%arg0: i32, %arg1: i32) -> (i32, i32) {
    %c0_i32 = arith.constant 0 : i32
    %c0_i32_0 = arith.constant 0 : i32
    %c0_i32_1 = arith.constant 0 : i32
    return %c0_i32, %c0_i32_0 : i32, i32
  }
  func.func @transform_7(%arg0: i32, %arg1: i32) -> (i32, i32) {
    %c0_i32 = arith.constant 0 : i32
    %c0_i32_0 = arith.constant 0 : i32
    %c0_i32_1 = arith.constant 0 : i32
    return %c0_i32, %c0_i32_0 : i32, i32
  }
  func.func @transform_8(%arg0: i32, %arg1: i32) -> (i32, i32) {
    %c0_i32 = arith.constant 0 : i32
    %c0_i32_0 = arith.constant 0 : i32
    %c0_i32_1 = arith.constant 0 : i32
    return %c0_i32, %c0_i32_0 : i32, i32
  }
  func.func @transform_9(%arg0: i32, %arg1: i32) -> (i32, i32) {
    %c0_i32 = arith.constant 0 : i32
    %c0_i32_0 = arith.constant 0 : i32
    %c0_i32_1 = arith.constant 0 : i32
    return %c0_i32, %c0_i32_0 : i32, i32
  }
  func.func @transform_10(%arg0: i32, %arg1: i32) -> (i32, i32) {
    %c0_i32 = arith.constant 0 : i32
    %c0_i32_0 = arith.constant 0 : i32
    %c0_i32_1 = arith.constant 0 : i32
    return %c0_i32, %c0_i32_0 : i32, i32
  }
  func.func @transform_11(%arg0: i32, %arg1: i32) -> (i32, i32) {
    %c0_i32 = arith.constant 0 : i32
    %c0_i32_0 = arith.constant 0 : i32
    %c0_i32_1 = arith.constant 0 : i32
    return %c0_i32, %c0_i32_0 : i32, i32
  }
  func.func @transform_12(%arg0: i32, %arg1: i32) -> (i32, i32) {
    %c0_i32 = arith.constant 0 : i32
    %c0_i32_0 = arith.constant 0 : i32
    %c0_i32_1 = arith.constant 0 : i32
    return %c0_i32, %c0_i32_0 : i32, i32
  }
  func.func @transform_13(%arg0: i32, %arg1: i32) -> (i32, i32) {
    %c0_i32 = arith.constant 0 : i32
    %c0_i32_0 = arith.constant 0 : i32
    %c0_i32_1 = arith.constant 0 : i32
    return %c0_i32, %c0_i32_0 : i32, i32
  }
  func.func @transform_14(%arg0: i32, %arg1: i32) -> (i32, i32) {
    %c0_i32 = arith.constant 0 : i32
    %c0_i32_0 = arith.constant 0 : i32
    %c0_i32_1 = arith.constant 0 : i32
    return %c0_i32, %c0_i32_0 : i32, i32
  }
  func.func @transform_15(%arg0: i32, %arg1: i32) -> (i32, i32, i32) {
    %c0_i32 = arith.constant 0 : i32
    %c0_i32_0 = arith.constant 0 : i32
    return %arg0, %arg1, %c0_i32 : i32, i32, i32
  }
  func.func @transform_16(%arg0: i32, %arg1: i32) -> (i32, i32, i32, i32) {
    %c0_i32 = arith.constant 0 : i32
    %c0_i32_0 = arith.constant 0 : i32
    %c0_i32_1 = arith.constant 0 : i32
    return %arg0, %c0_i32, %arg1, %c0_i32_0 : i32, i32, i32, i32
  }
}

module attributes {stable_mosaic.version = 11 : i64} {
  func.func @cross_feature_attention_kernel(%arg0: i32, %arg1: i32, %arg2: memref<1x8x32xf32, #tpu.memory_space<vmem>>, %arg3: memref<32x96xbf16, #tpu.memory_space<vmem>>, %arg4: memref<1x96xf32, #tpu.memory_space<vmem>>, %arg5: memref<4x8x32xbf16, #tpu.memory_space<vmem>>, %arg6: memref<1x32xf32, #tpu.memory_space<vmem>>, %arg7: memref<32x128xbf16, #tpu.memory_space<vmem>>, %arg8: memref<1x128xf32, #tpu.memory_space<vmem>>, %arg9: memref<128x32xbf16, #tpu.memory_space<vmem>>, %arg10: memref<1x32xf32, #tpu.memory_space<vmem>>, %arg11: memref<1x1xf32, #tpu.memory_space<vmem>>, %arg12: memref<1x32xf32, #tpu.memory_space<vmem>>, %arg13: memref<1x32xf32, #tpu.memory_space<vmem>>, %arg14: memref<1x1xf32, #tpu.memory_space<vmem>>, %arg15: memref<1x32xf32, #tpu.memory_space<vmem>>, %arg16: memref<1x32xf32, #tpu.memory_space<vmem>>, %arg17: memref<1x8x32xf32, #tpu.memory_space<vmem>>, %arg18: memref<1x4x8x8xbf16, #tpu.memory_space<vmem>>, %arg19: memref<4x8x8xbf16, #tpu.memory_space<vmem>>, %arg20: memref<4x8x8xbf16, #tpu.memory_space<vmem>>, %arg21: memref<4x8x8xbf16, #tpu.memory_space<vmem>>) attributes {dimension_semantics = [#tpu.dimension_semantics<parallel>, #tpu.dimension_semantics<arbitrary>], iteration_bounds = array<i64: 2, 1>, scalar_prefetch = 0 : i64, scratch_operands = 3 : i64, tpu.core_type = #tpu.core_type<tc>, window_params = [{transform_indices = @transform_0, window_bounds = array<i64: 1, 8, 32>}, {pipeline_mode = #tpu.pipeline_mode<synchronous>, transform_indices = @transform_1, window_bounds = array<i64: 32, 96>}, {pipeline_mode = #tpu.pipeline_mode<synchronous>, transform_indices = @transform_2, window_bounds = array<i64: 1, 96>}, {pipeline_mode = #tpu.pipeline_mode<synchronous>, transform_indices = @transform_3, window_bounds = array<i64: 4, 8, 32>}, {pipeline_mode = #tpu.pipeline_mode<synchronous>, transform_indices = @transform_4, window_bounds = array<i64: 1, 32>}, {pipeline_mode = #tpu.pipeline_mode<synchronous>, transform_indices = @transform_5, window_bounds = array<i64: 32, 128>}, {pipeline_mode = #tpu.pipeline_mode<synchronous>, transform_indices = @transform_6, window_bounds = array<i64: 1, 128>}, {pipeline_mode = #tpu.pipeline_mode<synchronous>, transform_indices = @transform_7, window_bounds = array<i64: 128, 32>}, {pipeline_mode = #tpu.pipeline_mode<synchronous>, transform_indices = @transform_8, window_bounds = array<i64: 1, 32>}, {pipeline_mode = #tpu.pipeline_mode<synchronous>, transform_indices = @transform_9, window_bounds = array<i64: 1, 1>}, {pipeline_mode = #tpu.pipeline_mode<synchronous>, transform_indices = @transform_10, window_bounds = array<i64: 1, 32>}, {pipeline_mode = #tpu.pipeline_mode<synchronous>, transform_indices = @transform_11, window_bounds = array<i64: 1, 32>}, {pipeline_mode = #tpu.pipeline_mode<synchronous>, transform_indices = @transform_12, window_bounds = array<i64: 1, 1>}, {pipeline_mode = #tpu.pipeline_mode<synchronous>, transform_indices = @transform_13, window_bounds = array<i64: 1, 32>}, {pipeline_mode = #tpu.pipeline_mode<synchronous>, transform_indices = @transform_14, window_bounds = array<i64: 1, 32>}, {transform_indices = @transform_15, window_bounds = array<i64: 1, 8, 32>}, {transform_indices = @transform_16, window_bounds = array<i64: 1, 4, 8, 8>}]} {
    %c0_i32 = arith.constant 0 : i32
    %0 = arith.cmpi eq, %arg1, %c0_i32 : i32
    %1 = arith.extui %0 : i1 to i32
    %c0_i32_0 = arith.constant 0 : i32
    %2 = arith.cmpi ne, %1, %c0_i32_0 : i32
    scf.if %2 {
      %c0_51 = arith.constant 0 : index
      %c0_52 = arith.constant 0 : index
      %c0_53 = arith.constant 0 : index
      %76 = vector.load %arg2[%c0_51, %c0_52, %c0_53] : memref<1x8x32xf32, #tpu.memory_space<vmem>>, vector<1x8x32xf32>
      %77 = vector.shape_cast %76 : vector<1x8x32xf32> to vector<8x32xf32>
      %78 = arith.truncf %77 : vector<8x32xf32> to vector<8x32xbf16>
      %c0_54 = arith.constant 0 : index
      %c0_55 = arith.constant 0 : index
      %79 = vector.load %arg3[%c0_54, %c0_55] : memref<32x96xbf16, #tpu.memory_space<vmem>>, vector<32x96xbf16>
      %cst_56 = arith.constant dense<0.000000e+00> : vector<8x96xf32>
      %80 = tpu.matmul %78, %79, %cst_56 {dimension_numbers = #tpu.dot_dimension_numbers<[1], [0], [0], [1], [0, 0, 1, 1], [], []>} : vector<8x32xbf16>, vector<32x96xbf16>, vector<8x96xf32> -> vector<8x96xf32>
      %c0_57 = arith.constant 0 : index
      %c0_58 = arith.constant 0 : index
      %81 = vector.load %arg4[%c0_57, %c0_58] : memref<1x96xf32, #tpu.memory_space<vmem>>, vector<1x96xf32>
      %82 = vector.broadcast %81 : vector<1x96xf32> to vector<8x96xf32>
      %83 = arith.addf %80, %82 : vector<8x96xf32>
      %84 = arith.truncf %83 : vector<8x96xf32> to vector<8x96xbf16>
      %85 = vector.extract_strided_slice %84 {offsets = [0, 0], sizes = [8, 8], strides = [1, 1]} : vector<8x96xbf16> to vector<8x8xbf16>
      %c0_59 = arith.constant 0 : index
      %c0_60 = arith.constant 0 : index
      %c0_61 = arith.constant 0 : index
      %86 = vector.load %arg19[%c0_59, %c0_60, %c0_61] : memref<4x8x8xbf16, #tpu.memory_space<vmem>>, vector<1x8x8xbf16>
      %87 = vector.shape_cast %86 : vector<1x8x8xbf16> to vector<8x8xbf16>
      %88 = vector.shape_cast %85 : vector<8x8xbf16> to vector<1x8x8xbf16>
      tpu.vector_store %arg19[%c0_59, %c0_60, %c0_61], %88 {strides = array<i32>} : memref<4x8x8xbf16, #tpu.memory_space<vmem>>, vector<1x8x8xbf16>,
      %89 = vector.extract_strided_slice %84 {offsets = [0, 32], sizes = [8, 8], strides = [1, 1]} : vector<8x96xbf16> to vector<8x8xbf16>
      %c0_62 = arith.constant 0 : index
      %c0_63 = arith.constant 0 : index
      %c0_64 = arith.constant 0 : index
      %90 = vector.load %arg20[%c0_62, %c0_63, %c0_64] : memref<4x8x8xbf16, #tpu.memory_space<vmem>>, vector<1x8x8xbf16>
      %91 = vector.shape_cast %90 : vector<1x8x8xbf16> to vector<8x8xbf16>
      %92 = vector.shape_cast %89 : vector<8x8xbf16> to vector<1x8x8xbf16>
      tpu.vector_store %arg20[%c0_62, %c0_63, %c0_64], %92 {strides = array<i32>} : memref<4x8x8xbf16, #tpu.memory_space<vmem>>, vector<1x8x8xbf16>,
      %93 = vector.extract_strided_slice %84 {offsets = [0, 64], sizes = [8, 8], strides = [1, 1]} : vector<8x96xbf16> to vector<8x8xbf16>
      %c0_65 = arith.constant 0 : index
      %c0_66 = arith.constant 0 : index
      %c0_67 = arith.constant 0 : index
      %94 = vector.load %arg21[%c0_65, %c0_66, %c0_67] : memref<4x8x8xbf16, #tpu.memory_space<vmem>>, vector<1x8x8xbf16>
      %95 = vector.shape_cast %94 : vector<1x8x8xbf16> to vector<8x8xbf16>
      %96 = vector.shape_cast %93 : vector<8x8xbf16> to vector<1x8x8xbf16>
      tpu.vector_store %arg21[%c0_65, %c0_66, %c0_67], %96 {strides = array<i32>} : memref<4x8x8xbf16, #tpu.memory_space<vmem>>, vector<1x8x8xbf16>,
      %97 = vector.extract_strided_slice %84 {offsets = [0, 8], sizes = [8, 8], strides = [1, 1]} : vector<8x96xbf16> to vector<8x8xbf16>
      %c1 = arith.constant 1 : index
      %c0_68 = arith.constant 0 : index
      %c0_69 = arith.constant 0 : index
      %98 = vector.load %arg19[%c1, %c0_68, %c0_69] : memref<4x8x8xbf16, #tpu.memory_space<vmem>>, vector<1x8x8xbf16>
      %99 = vector.shape_cast %98 : vector<1x8x8xbf16> to vector<8x8xbf16>
      %100 = vector.shape_cast %97 : vector<8x8xbf16> to vector<1x8x8xbf16>
      tpu.vector_store %arg19[%c1, %c0_68, %c0_69], %100 {strides = array<i32>} : memref<4x8x8xbf16, #tpu.memory_space<vmem>>, vector<1x8x8xbf16>,
      %101 = vector.extract_strided_slice %84 {offsets = [0, 40], sizes = [8, 8], strides = [1, 1]} : vector<8x96xbf16> to vector<8x8xbf16>
      %c1_70 = arith.constant 1 : index
      %c0_71 = arith.constant 0 : index
      %c0_72 = arith.constant 0 : index
      %102 = vector.load %arg20[%c1_70, %c0_71, %c0_72] : memref<4x8x8xbf16, #tpu.memory_space<vmem>>, vector<1x8x8xbf16>
      %103 = vector.shape_cast %102 : vector<1x8x8xbf16> to vector<8x8xbf16>
      %104 = vector.shape_cast %101 : vector<8x8xbf16> to vector<1x8x8xbf16>
      tpu.vector_store %arg20[%c1_70, %c0_71, %c0_72], %104 {strides = array<i32>} : memref<4x8x8xbf16, #tpu.memory_space<vmem>>, vector<1x8x8xbf16>,
      %105 = vector.extract_strided_slice %84 {offsets = [0, 72], sizes = [8, 8], strides = [1, 1]} : vector<8x96xbf16> to vector<8x8xbf16>
      %c1_73 = arith.constant 1 : index
      %c0_74 = arith.constant 0 : index
      %c0_75 = arith.constant 0 : index
      %106 = vector.load %arg21[%c1_73, %c0_74, %c0_75] : memref<4x8x8xbf16, #tpu.memory_space<vmem>>, vector<1x8x8xbf16>
      %107 = vector.shape_cast %106 : vector<1x8x8xbf16> to vector<8x8xbf16>
      %108 = vector.shape_cast %105 : vector<8x8xbf16> to vector<1x8x8xbf16>
      tpu.vector_store %arg21[%c1_73, %c0_74, %c0_75], %108 {strides = array<i32>} : memref<4x8x8xbf16, #tpu.memory_space<vmem>>, vector<1x8x8xbf16>,
      %109 = vector.extract_strided_slice %84 {offsets = [0, 16], sizes = [8, 8], strides = [1, 1]} : vector<8x96xbf16> to vector<8x8xbf16>
      %c2 = arith.constant 2 : index
      %c0_76 = arith.constant 0 : index
      %c0_77 = arith.constant 0 : index
      %110 = vector.load %arg19[%c2, %c0_76, %c0_77] : memref<4x8x8xbf16, #tpu.memory_space<vmem>>, vector<1x8x8xbf16>
      %111 = vector.shape_cast %110 : vector<1x8x8xbf16> to vector<8x8xbf16>
      %112 = vector.shape_cast %109 : vector<8x8xbf16> to vector<1x8x8xbf16>
      tpu.vector_store %arg19[%c2, %c0_76, %c0_77], %112 {strides = array<i32>} : memref<4x8x8xbf16, #tpu.memory_space<vmem>>, vector<1x8x8xbf16>,
      %113 = vector.extract_strided_slice %84 {offsets = [0, 48], sizes = [8, 8], strides = [1, 1]} : vector<8x96xbf16> to vector<8x8xbf16>
      %c2_78 = arith.constant 2 : index
      %c0_79 = arith.constant 0 : index
      %c0_80 = arith.constant 0 : index
      %114 = vector.load %arg20[%c2_78, %c0_79, %c0_80] : memref<4x8x8xbf16, #tpu.memory_space<vmem>>, vector<1x8x8xbf16>
      %115 = vector.shape_cast %114 : vector<1x8x8xbf16> to vector<8x8xbf16>
      %116 = vector.shape_cast %113 : vector<8x8xbf16> to vector<1x8x8xbf16>
      tpu.vector_store %arg20[%c2_78, %c0_79, %c0_80], %116 {strides = array<i32>} : memref<4x8x8xbf16, #tpu.memory_space<vmem>>, vector<1x8x8xbf16>,
      %117 = vector.extract_strided_slice %84 {offsets = [0, 80], sizes = [8, 8], strides = [1, 1]} : vector<8x96xbf16> to vector<8x8xbf16>
      %c2_81 = arith.constant 2 : index
      %c0_82 = arith.constant 0 : index
      %c0_83 = arith.constant 0 : index
      %118 = vector.load %arg21[%c2_81, %c0_82, %c0_83] : memref<4x8x8xbf16, #tpu.memory_space<vmem>>, vector<1x8x8xbf16>
      %119 = vector.shape_cast %118 : vector<1x8x8xbf16> to vector<8x8xbf16>
      %120 = vector.shape_cast %117 : vector<8x8xbf16> to vector<1x8x8xbf16>
      tpu.vector_store %arg21[%c2_81, %c0_82, %c0_83], %120 {strides = array<i32>} : memref<4x8x8xbf16, #tpu.memory_space<vmem>>, vector<1x8x8xbf16>,
      %121 = vector.extract_strided_slice %84 {offsets = [0, 24], sizes = [8, 8], strides = [1, 1]} : vector<8x96xbf16> to vector<8x8xbf16>
      %c3 = arith.constant 3 : index
      %c0_84 = arith.constant 0 : index
      %c0_85 = arith.constant 0 : index
      %122 = vector.load %arg19[%c3, %c0_84, %c0_85] : memref<4x8x8xbf16, #tpu.memory_space<vmem>>, vector<1x8x8xbf16>
      %123 = vector.shape_cast %122 : vector<1x8x8xbf16> to vector<8x8xbf16>
      %124 = vector.shape_cast %121 : vector<8x8xbf16> to vector<1x8x8xbf16>
      tpu.vector_store %arg19[%c3, %c0_84, %c0_85], %124 {strides = array<i32>} : memref<4x8x8xbf16, #tpu.memory_space<vmem>>, vector<1x8x8xbf16>,
      %125 = vector.extract_strided_slice %84 {offsets = [0, 56], sizes = [8, 8], strides = [1, 1]} : vector<8x96xbf16> to vector<8x8xbf16>
      %c3_86 = arith.constant 3 : index
      %c0_87 = arith.constant 0 : index
      %c0_88 = arith.constant 0 : index
      %126 = vector.load %arg20[%c3_86, %c0_87, %c0_88] : memref<4x8x8xbf16, #tpu.memory_space<vmem>>, vector<1x8x8xbf16>
      %127 = vector.shape_cast %126 : vector<1x8x8xbf16> to vector<8x8xbf16>
      %128 = vector.shape_cast %125 : vector<8x8xbf16> to vector<1x8x8xbf16>
      tpu.vector_store %arg20[%c3_86, %c0_87, %c0_88], %128 {strides = array<i32>} : memref<4x8x8xbf16, #tpu.memory_space<vmem>>, vector<1x8x8xbf16>,
      %129 = vector.extract_strided_slice %84 {offsets = [0, 88], sizes = [8, 8], strides = [1, 1]} : vector<8x96xbf16> to vector<8x8xbf16>
      %c3_89 = arith.constant 3 : index
      %c0_90 = arith.constant 0 : index
      %c0_91 = arith.constant 0 : index
      %130 = vector.load %arg21[%c3_89, %c0_90, %c0_91] : memref<4x8x8xbf16, #tpu.memory_space<vmem>>, vector<1x8x8xbf16>
      %131 = vector.shape_cast %130 : vector<1x8x8xbf16> to vector<8x8xbf16>
      %132 = vector.shape_cast %129 : vector<8x8xbf16> to vector<1x8x8xbf16>
      tpu.vector_store %arg21[%c3_89, %c0_90, %c0_91], %132 {strides = array<i32>} : memref<4x8x8xbf16, #tpu.memory_space<vmem>>, vector<1x8x8xbf16>,
    } else {
    }
    %c8_i32 = arith.constant 8 : i32
    %3 = arith.muli %arg1, %c8_i32 : i32
    %4 = tpu.assume_multiple %3, 8 : i32
    %c0 = arith.constant 0 : index
    %5 = arith.index_cast %4 : i32 to index
    %c0_1 = arith.constant 0 : index
    %6 = vector.load %arg19[%c0, %5, %c0_1] : memref<4x8x8xbf16, #tpu.memory_space<vmem>>, vector<4x8x8xbf16>
    %c0_2 = arith.constant 0 : index
    %c0_3 = arith.constant 0 : index
    %c0_4 = arith.constant 0 : index
    %7 = vector.load %arg20[%c0_2, %c0_3, %c0_4] : memref<4x8x8xbf16, #tpu.memory_space<vmem>>, vector<4x8x8xbf16>
    %c0_5 = arith.constant 0 : index
    %c0_6 = arith.constant 0 : index
    %c0_7 = arith.constant 0 : index
    %8 = vector.load %arg21[%c0_5, %c0_6, %c0_7] : memref<4x8x8xbf16, #tpu.memory_space<vmem>>, vector<4x8x8xbf16>
    "tpu.trace_start"() <{level = 10 : i32, message = "hqd,hkd->hqk"}> : () -> ()
    %cst = arith.constant dense<0.000000e+00> : vector<4x8x8xf32>
    %9 = tpu.matmul %6, %7, %cst {dimension_numbers = #tpu.dot_dimension_numbers<[2], [2], [1], [1], [0, 0, 0, 1, 1, 1], [0], [0]>} : vector<4x8x8xbf16>, vector<4x8x8xbf16>, vector<4x8x8xf32> -> vector<4x8x8xf32>
    "tpu.trace_stop"() : () -> ()
    %cst_8 = arith.constant 0.353553385 : f32
    %10 = vector.broadcast %cst_8 : f32 to vector<4x8x8xf32>
    %11 = arith.mulf %9, %10 : vector<4x8x8xf32>
    %cst_9 = arith.constant dense<0xFF800000> : vector<4x8xf32>
    %12 = vector.multi_reduction <maximumf>, %11, %cst_9 [2] : vector<4x8x8xf32> to vector<4x8xf32>
    %13 = vector.shape_cast %12 : vector<4x8xf32> to vector<4x8x1xf32>
    %14 = vector.broadcast %13 : vector<4x8x1xf32> to vector<4x8x8xf32>
    %15 = arith.subf %11, %14 : vector<4x8x8xf32>
    %16 = math.exp %15 : vector<4x8x8xf32>
    %cst_10 = arith.constant dense<0.000000e+00> : vector<4x8xf32>
    %17 = vector.multi_reduction <add>, %16, %cst_10 [2] : vector<4x8x8xf32> to vector<4x8xf32>
    %18 = vector.shape_cast %17 : vector<4x8xf32> to vector<4x8x1xf32>
    %19 = vector.broadcast %18 : vector<4x8x1xf32> to vector<4x8x8xf32>
    %20 = arith.divf %16, %19 : vector<4x8x8xf32>
    %21 = arith.truncf %20 : vector<4x8x8xf32> to vector<4x8x8xbf16>
    %c0_11 = arith.constant 0 : index
    %c0_12 = arith.constant 0 : index
    %c0_13 = arith.constant 0 : index
    %c0_14 = arith.constant 0 : index
    %22 = vector.load %arg18[%c0_11, %c0_12, %c0_13, %c0_14] : memref<1x4x8x8xbf16, #tpu.memory_space<vmem>>, vector<1x4x8x8xbf16>
    %23 = vector.shape_cast %22 : vector<1x4x8x8xbf16> to vector<4x8x8xbf16>
    %24 = vector.shape_cast %21 : vector<4x8x8xbf16> to vector<1x4x8x8xbf16>
    tpu.vector_store %arg18[%c0_11, %c0_12, %c0_13, %c0_14], %24 {strides = array<i32>} : memref<1x4x8x8xbf16, #tpu.memory_space<vmem>>, vector<1x4x8x8xbf16>,
    %25 = arith.truncf %20 : vector<4x8x8xf32> to vector<4x8x8xbf16>
    "tpu.trace_start"() <{level = 10 : i32, message = "hqk,hkd->hqd"}> : () -> ()
    %cst_15 = arith.constant dense<0.000000e+00> : vector<4x8x8xf32>
    %26 = tpu.matmul %25, %8, %cst_15 {dimension_numbers = #tpu.dot_dimension_numbers<[2], [1], [1], [2], [0, 0, 0, 1, 1, 2], [0], [0]>} : vector<4x8x8xbf16>, vector<4x8x8xbf16>, vector<4x8x8xf32> -> vector<4x8x8xf32>
    "tpu.trace_stop"() : () -> ()
    %27 = arith.truncf %26 : vector<4x8x8xf32> to vector<4x8x8xbf16>
    %c0_16 = arith.constant 0 : index
    %c0_17 = arith.constant 0 : index
    %c0_18 = arith.constant 0 : index
    %28 = vector.load %arg5[%c0_16, %c0_17, %c0_18] : memref<4x8x32xbf16, #tpu.memory_space<vmem>>, vector<4x8x32xbf16>
    "tpu.trace_start"() <{level = 10 : i32, message = "hqd,hde->hqe"}> : () -> ()
    %cst_19 = arith.constant dense<0.000000e+00> : vector<4x8x32xf32>
    %29 = tpu.matmul %27, %28, %cst_19 {dimension_numbers = #tpu.dot_dimension_numbers<[2], [1], [1], [2], [0, 0, 0, 1, 1, 2], [0], [0]>} : vector<4x8x8xbf16>, vector<4x8x32xbf16>, vector<4x8x32xf32> -> vector<4x8x32xf32>
    "tpu.trace_stop"() : () -> ()
    %cst_20 = arith.constant dense<0.000000e+00> : vector<8x32xf32>
    %30 = vector.multi_reduction <add>, %29, %cst_20 [0] : vector<4x8x32xf32> to vector<8x32xf32>
    %c0_21 = arith.constant 0 : index
    %c0_22 = arith.constant 0 : index
    %31 = vector.load %arg6[%c0_21, %c0_22] : memref<1x32xf32, #tpu.memory_space<vmem>>, vector<1x32xf32>
    %32 = vector.broadcast %31 : vector<1x32xf32> to vector<8x32xf32>
    %33 = arith.addf %30, %32 : vector<8x32xf32>
    %c0_23 = arith.constant 0 : index
    %34 = arith.index_cast %4 : i32 to index
    %c0_24 = arith.constant 0 : index
    %35 = vector.load %arg2[%c0_23, %34, %c0_24] : memref<1x8x32xf32, #tpu.memory_space<vmem>>, vector<1x8x32xf32>
    %36 = vector.shape_cast %35 : vector<1x8x32xf32> to vector<8x32xf32>
    %37 = arith.addf %36, %33 : vector<8x32xf32>
    %c0_25 = arith.constant 0 : index
    %c0_26 = arith.constant 0 : index
    %38 = vector.load %arg11[%c0_25, %c0_26] : memref<1x1xf32, #tpu.memory_space<vmem>>, vector<1x1xf32>
    %c0_27 = arith.constant 0 : index
    %c0_28 = arith.constant 0 : index
    %39 = vector.load %arg12[%c0_27, %c0_28] : memref<1x32xf32, #tpu.memory_space<vmem>>, vector<1x32xf32>
    %c0_29 = arith.constant 0 : index
    %c0_30 = arith.constant 0 : index
    %40 = vector.load %arg13[%c0_29, %c0_30] : memref<1x32xf32, #tpu.memory_space<vmem>>, vector<1x32xf32>
    %41 = vector.broadcast %38 : vector<1x1xf32> to vector<8x32xf32>
    %42 = arith.mulf %41, %37 : vector<8x32xf32>
    %43 = math.tanh %42 : vector<8x32xf32>
    %44 = vector.broadcast %39 : vector<1x32xf32> to vector<8x32xf32>
    %45 = arith.mulf %43, %44 : vector<8x32xf32>
    %46 = vector.broadcast %40 : vector<1x32xf32> to vector<8x32xf32>
    %47 = arith.addf %45, %46 : vector<8x32xf32>
    %48 = arith.truncf %47 : vector<8x32xf32> to vector<8x32xbf16>
    %c0_31 = arith.constant 0 : index
    %c0_32 = arith.constant 0 : index
    %49 = vector.load %arg7[%c0_31, %c0_32] : memref<32x128xbf16, #tpu.memory_space<vmem>>, vector<32x128xbf16>
    %cst_33 = arith.constant dense<0.000000e+00> : vector<8x128xf32>
    %50 = tpu.matmul %48, %49, %cst_33 {dimension_numbers = #tpu.dot_dimension_numbers<[1], [0], [0], [1], [0, 0, 1, 1], [], []>} : vector<8x32xbf16>, vector<32x128xbf16>, vector<8x128xf32> -> vector<8x128xf32>
    %c0_34 = arith.constant 0 : index
    %c0_35 = arith.constant 0 : index
    %51 = vector.load %arg8[%c0_34, %c0_35] : memref<1x128xf32, #tpu.memory_space<vmem>>, vector<1x128xf32>
    %52 = vector.broadcast %51 : vector<1x128xf32> to vector<8x128xf32>
    %53 = arith.addf %50, %52 : vector<8x128xf32>
    %cst_36 = arith.constant 0.000000e+00 : f32
    %54 = vector.broadcast %cst_36 : f32 to vector<8x128xf32>
    %55 = arith.maximumf %53, %54 : vector<8x128xf32>
    %56 = arith.truncf %55 : vector<8x128xf32> to vector<8x128xbf16>
    %c0_37 = arith.constant 0 : index
    %c0_38 = arith.constant 0 : index
    %57 = vector.load %arg9[%c0_37, %c0_38] : memref<128x32xbf16, #tpu.memory_space<vmem>>, vector<128x32xbf16>
    %cst_39 = arith.constant dense<0.000000e+00> : vector<8x32xf32>
    %58 = tpu.matmul %56, %57, %cst_39 {dimension_numbers = #tpu.dot_dimension_numbers<[1], [0], [0], [1], [0, 0, 1, 1], [], []>} : vector<8x128xbf16>, vector<128x32xbf16>, vector<8x32xf32> -> vector<8x32xf32>
    %c0_40 = arith.constant 0 : index
    %c0_41 = arith.constant 0 : index
    %59 = vector.load %arg10[%c0_40, %c0_41] : memref<1x32xf32, #tpu.memory_space<vmem>>, vector<1x32xf32>
    %60 = vector.broadcast %59 : vector<1x32xf32> to vector<8x32xf32>
    %61 = arith.addf %58, %60 : vector<8x32xf32>
    %62 = arith.addf %47, %61 : vector<8x32xf32>
    %c0_42 = arith.constant 0 : index
    %c0_43 = arith.constant 0 : index
    %63 = vector.load %arg14[%c0_42, %c0_43] : memref<1x1xf32, #tpu.memory_space<vmem>>, vector<1x1xf32>
    %c0_44 = arith.constant 0 : index
    %c0_45 = arith.constant 0 : index
    %64 = vector.load %arg15[%c0_44, %c0_45] : memref<1x32xf32, #tpu.memory_space<vmem>>, vector<1x32xf32>
    %c0_46 = arith.constant 0 : index
    %c0_47 = arith.constant 0 : index
    %65 = vector.load %arg16[%c0_46, %c0_47] : memref<1x32xf32, #tpu.memory_space<vmem>>, vector<1x32xf32>
    %66 = vector.broadcast %63 : vector<1x1xf32> to vector<8x32xf32>
    %67 = arith.mulf %66, %62 : vector<8x32xf32>
    %68 = math.tanh %67 : vector<8x32xf32>
    %69 = vector.broadcast %64 : vector<1x32xf32> to vector<8x32xf32>
    %70 = arith.mulf %68, %69 : vector<8x32xf32>
    %71 = vector.broadcast %65 : vector<1x32xf32> to vector<8x32xf32>
    %72 = arith.addf %70, %71 : vector<8x32xf32>
    %c0_48 = arith.constant 0 : index
    %c0_49 = arith.constant 0 : index
    %c0_50 = arith.constant 0 : index
    %73 = vector.load %arg17[%c0_48, %c0_49, %c0_50] : memref<1x8x32xf32, #tpu.memory_space<vmem>>, vector<1x8x32xf32>
    %74 = vector.shape_cast %73 : vector<1x8x32xf32> to vector<8x32xf32>
    %75 = vector.shape_cast %72 : vector<8x32xf32> to vector<1x8x32xf32>
    tpu.vector_store %arg17[%c0_48, %c0_49, %c0_50], %75 {strides = array<i32>} : memref<1x8x32xf32, #tpu.memory_space<vmem>>, vector<1x8x32xf32>,
    return
  }
  func.func @transform_0(%arg0: i32, %arg1: i32) -> (i32, i32, i32) {
    %c0_i32 = arith.constant 0 : i32
    %c0_i32_0 = arith.constant 0 : i32
    %c0_i32_1 = arith.constant 0 : i32
    return %arg0, %c0_i32, %c0_i32_0 : i32, i32, i32
  }
  func.func @transform_1(%arg0: i32, %arg1: i32) -> (i32, i32) {
    %c0_i32 = arith.constant 0 : i32
    %c0_i32_0 = arith.constant 0 : i32
    %c0_i32_1 = arith.constant 0 : i32
    return %c0_i32, %c0_i32_0 : i32, i32
  }
  func.func @transform_2(%arg0: i32, %arg1: i32) -> (i32, i32) {
    %c0_i32 = arith.constant 0 : i32
    %c0_i32_0 = arith.constant 0 : i32
    %c0_i32_1 = arith.constant 0 : i32
    return %c0_i32, %c0_i32_0 : i32, i32
  }
  func.func @transform_3(%arg0: i32, %arg1: i32) -> (i32, i32, i32) {
    %c0_i32 = arith.constant 0 : i32
    %c0_i32_0 = arith.constant 0 : i32
    %c0_i32_1 = arith.constant 0 : i32
    %c0_i32_2 = arith.constant 0 : i32
    return %c0_i32, %c0_i32_0, %c0_i32_1 : i32, i32, i32
  }
  func.func @transform_4(%arg0: i32, %arg1: i32) -> (i32, i32) {
    %c0_i32 = arith.constant 0 : i32
    %c0_i32_0 = arith.constant 0 : i32
    %c0_i32_1 = arith.constant 0 : i32
    return %c0_i32, %c0_i32_0 : i32, i32
  }
  func.func @transform_5(%arg0: i32, %arg1: i32) -> (i32, i32) {
    %c0_i32 = arith.constant 0 : i32
    %c0_i32_0 = arith.constant 0 : i32
    %c0_i32_1 = arith.constant 0 : i32
    return %c0_i32, %c0_i32_0 : i32, i32
  }
  func.func @transform_6(%arg0: i32, %arg1: i32) -> (i32, i32) {
    %c0_i32 = arith.constant 0 : i32
    %c0_i32_0 = arith.constant 0 : i32
    %c0_i32_1 = arith.constant 0 : i32
    return %c0_i32, %c0_i32_0 : i32, i32
  }
  func.func @transform_7(%arg0: i32, %arg1: i32) -> (i32, i32) {
    %c0_i32 = arith.constant 0 : i32
    %c0_i32_0 = arith.constant 0 : i32
    %c0_i32_1 = arith.constant 0 : i32
    return %c0_i32, %c0_i32_0 : i32, i32
  }
  func.func @transform_8(%arg0: i32, %arg1: i32) -> (i32, i32) {
    %c0_i32 = arith.constant 0 : i32
    %c0_i32_0 = arith.constant 0 : i32
    %c0_i32_1 = arith.constant 0 : i32
    return %c0_i32, %c0_i32_0 : i32, i32
  }
  func.func @transform_9(%arg0: i32, %arg1: i32) -> (i32, i32) {
    %c0_i32 = arith.constant 0 : i32
    %c0_i32_0 = arith.constant 0 : i32
    %c0_i32_1 = arith.constant 0 : i32
    return %c0_i32, %c0_i32_0 : i32, i32
  }
  func.func @transform_10(%arg0: i32, %arg1: i32) -> (i32, i32) {
    %c0_i32 = arith.constant 0 : i32
    %c0_i32_0 = arith.constant 0 : i32
    %c0_i32_1 = arith.constant 0 : i32
    return %c0_i32, %c0_i32_0 : i32, i32
  }
  func.func @transform_11(%arg0: i32, %arg1: i32) -> (i32, i32) {
    %c0_i32 = arith.constant 0 : i32
    %c0_i32_0 = arith.constant 0 : i32
    %c0_i32_1 = arith.constant 0 : i32
    return %c0_i32, %c0_i32_0 : i32, i32
  }
  func.func @transform_12(%arg0: i32, %arg1: i32) -> (i32, i32) {
    %c0_i32 = arith.constant 0 : i32
    %c0_i32_0 = arith.constant 0 : i32
    %c0_i32_1 = arith.constant 0 : i32
    return %c0_i32, %c0_i32_0 : i32, i32
  }
  func.func @transform_13(%arg0: i32, %arg1: i32) -> (i32, i32) {
    %c0_i32 = arith.constant 0 : i32
    %c0_i32_0 = arith.constant 0 : i32
    %c0_i32_1 = arith.constant 0 : i32
    return %c0_i32, %c0_i32_0 : i32, i32
  }
  func.func @transform_14(%arg0: i32, %arg1: i32) -> (i32, i32) {
    %c0_i32 = arith.constant 0 : i32
    %c0_i32_0 = arith.constant 0 : i32
    %c0_i32_1 = arith.constant 0 : i32
    return %c0_i32, %c0_i32_0 : i32, i32
  }
  func.func @transform_15(%arg0: i32, %arg1: i32) -> (i32, i32, i32) {
    %c0_i32 = arith.constant 0 : i32
    %c0_i32_0 = arith.constant 0 : i32
    return %arg0, %arg1, %c0_i32 : i32, i32, i32
  }
  func.func @transform_16(%arg0: i32, %arg1: i32) -> (i32, i32, i32, i32) {
    %c0_i32 = arith.constant 0 : i32
    %c0_i32_0 = arith.constant 0 : i32
    %c0_i32_1 = arith.constant 0 : i32
    return %arg0, %c0_i32, %arg1, %c0_i32_0 : i32, i32, i32, i32
  }
}

</mosaic_0001>

<bundles_post_ra>
// kernel: cross_feature_attention.1
= control target key start
LH: loop header
LB: loop body
LE: loop exit
PB: predicated region body
PF: predicated region fallthrough
CT: control target
= control target key end

     0   :  { %s2606_s0 = inlined_call_operand.vmem [shape: f32[2,8,32], index: 0, kind: input, shape index: {}]   ;;  %s2607_s1 = inlined_call_operand.vmem [shape: bf16[32,96], index: 1, kind: input, shape index: {}]   ;;  %s2608_s2 = inlined_call_operand.vmem [shape: f32[1,96], index: 2, kind: input, shape index: {}]   ;;  %s2609_s3 = inlined_call_operand.vmem [shape: bf16[4,8,32], index: 3, kind: input, shape index: {}]   ;;  %s2610_s4 = inlined_call_operand.vmem [shape: f32[1,32], index: 4, kind: input, shape index: {}]   ;;  %s2611_s5 = inlined_call_operand.vmem [shape: bf16[32,128], index: 5, kind: input, shape index: {}]   ;;  %s2612_s6 = inlined_call_operand.vmem [shape: f32[1,128], index: 6, kind: input, shape index: {}]   ;;  %s2613_s7 = inlined_call_operand.vmem [shape: bf16[128,32], index: 7, kind: input, shape index: {}]   ;;  %s2614_s8 = inlined_call_operand.vmem [shape: f32[1,32], index: 8, kind: input, shape index: {}]   ;;  %s2615_s9 = inlined_call_operand.<no memory space> [shape: f32[1,1], index: 9, kind: input, shape index: {}]   ;;  %s2616_s10 = inlined_call_operand.vmem [shape: f32[1,32], index: 10, kind: input, shape index: {}]   ;;  %s2617_s11 = inlined_call_operand.vmem [shape: f32[1,32], index: 11, kind: input, shape index: {}]   ;;  %s2618_s13 = inlined_call_operand.vmem [shape: f32[1,32], index: 13, kind: input, shape index: {}]   ;;  %s2619_s14 = inlined_call_operand.vmem [shape: f32[1,32], index: 14, kind: input, shape index: {}]   ;;  %s2620_s15 = inlined_call_operand.hbm [shape: f32[2,8,32], index: 15, kind: output, shape index: {0}]   ;;  %s2621_s16 = inlined_call_operand.hbm [shape: bf16[2,4,8,8], index: 16, kind: output, shape index: {1}]   ;;  %s2622_s12 = inlined_call_operand.<no memory space> [shape: f32[1,1], index: 12, kind: input, shape index: {}]  }
   0x1   :  { %2625 = sst [smem:[#allocation14_spill]] %s2606_s0  ;;  %v22_v0 = vstv %s2615_s9  ;;  %v24_v1 = vstv %s2622_s12 }
   0x2   :  { %2626 = sst [smem:[#allocation15_spill]] %s2607_s1  ;;  %23 = vst [vmem:[#allocation5] sm:$0x1] %v22_v0  ;;  %25 = vst [vmem:[#allocation6] sm:$0x1] %v24_v1 }
   0x3   :  { %2627 = sst [smem:[#allocation16_spill]] %s2608_s2 }
   0x4   :  { %2628 = sst [smem:[#allocation17_spill]] %s2609_s3 }
   0x5   :  { %2629 = sst [smem:[#allocation18_spill]] %s2610_s4 }
   0x6   :  { %26 = vsyncpa [#allocation8], 0 }
   0x7   :  { %28 = vsyncpa [#allocation8 + $0x1], 0 }
   0x8   :  { %29 = vsyncpa [#allocation10], 0 }
   0x9   :  { %31 = vsyncpa [#allocation10 + $0x1], 0  ;;  %s2247_s25 = smov 0   ;;  %s2249_s26 = smov 0  }
   0xa   :  { %s2251_s27 = smov 0   ;;  %s2253_s28 = smov 0  }
   0xb   :  { %s2255_s29 = smov 0   ;;  %s2257_s9 = smov 0  }
   0xc LB: > { %s1717_s12 = sadd.s32 4294967295, %s2137_s9   ;;  %s1718_s30 = sadd.s32 4294967294, %s2137_s9   ;;  %s2137_s9 = sphi %s2257_s9, %s37_s9   ;;  %s2133_s29 = sphi %s2255_s29, %s2645_s29   ;;  %s2129_s28 = sphi %s2253_s28, %s2644_s28   ;;  %s2125_s27 = sphi %s2251_s27, %s2643_s27   ;;  %s2121_s26 = sphi %s2249_s26, %s2642_s26   ;;  %s2117_s25 = sphi %s2247_s25, %s2641_s25  }
   0xd   : > { %s49_s0 = sadd.s32 1, %s2133_s29  ;;  %s378_s17 = sadd.s32 1, %s2125_s27 }
   0xe   : > { %p51_p0 = scmp.ge.s32.totalorder %s49_s0, 2  ;;  %p388_p1 = scmp.ne.s32.totalorder %s2125_s27, %s2121_s26 }
   0xf   : > { %p389_p2 = scmp.eq.s32.totalorder %s1717_s12, 1  ;;  %p394_p3 = scmp.ne.s32.totalorder %s2121_s26, %s2117_s25 }
  0x10   : > { %s2647_s0 = smov (%p51_p0, %s49_s0), 0  ;;  %p395_p5 = scmp.eq.s32.totalorder %s1718_s30, 1 }
  0x11   : > { %2630 = sst [smem:[#allocation13_spill]] %s2647_s0  ;;  %p2287_p4 = por %p389_p2, %p388_p1 }
  0x12   : > { %s373_s19 = ssub.s32 %s2133_s29, %s2647_s0  ;;  %p1721_p6 = scmp.ge.s32.totalorder %s2137_s9, 1 }
  0x13   : > { %p376_p7 = scmp.eq.s32.totalorder %s373_s19, 0  ;;  %p2294_p8 = por %p395_p5, %p394_p3 }
  0x14   : > { %p490_p9 = scmp.lt.s32.totalorder %s2137_s9, 3 }
  0x15   : > { %s2300_s21 = scalar_select %p376_p7, %s2125_s27, %s378_s17  }
  0x16   : > { %p491_p10 = pnand %p1721_p6, %p490_p9 }
  0x17   : > { %s2633_s1 = sld [smem:[#allocation15_spill]] (!%p491_p10)  ;;  %v2139_v3 = vmov (!%p491_p10), 0.0   ;;  %vm2140_vm0 = vmmov (!%p491_p10), 0   ;;  %p544_p11 = scmp.lt.s32.totalorder (!%p491_p10), %s2129_s28, 1  ;;  %vm578_vm1 = vcmask (!%p491_p10), 261120   ;;  %vm623_vm2 = vcmask (!%p491_p10), 60416  }
  0x18   : > { %494 = sbr.rel (%p491_p10) target bundleno = 1852 (0x73c), region = 80  ;;  %1810 = vmatprep.subr.bf16.mxu1 (!%p491_p10), %v2139_v3  ;;  %1836 = vmatprep.subr.bf16.mxu0 (!%p491_p10), %v2139_v3  ;;  %s2634_s23 = sld [smem:[#allocation14_spill]] (!%p491_p10)  ;;  %vm698_vm3 = vcmask (!%p491_p10), 64512   ;;  %vm943_vm4 = vcmask (!%p491_p10), 1043456  }
  0x19   : > { %1814 = vmatprep.mubr.msk.bf16.mxu1 (!%p491_p10), %vm2140_vm0, %v2139_v3  ;;  %1838 = vmatprep.mubr.msk.bf16.mxu0 (!%p491_p10), %vm2140_vm0, %v2139_v3  ;;  %s2635_s2 = sld [smem:[#allocation16_spill]] (!%p491_p10)  ;;  %s2144_s19 = smov (!%p491_p10), 88  }
  0x1a   : > { %s2145_s22 = smov (!%p491_p10), 112   ;;  %s2147_s24 = smov (!%p491_p10), 104  }
  0x1b   : > { %s2148_s12 = smov (!%p491_p10), 56   ;;  %s2636_s3 = sld [smem:[#allocation17_spill]] (!%p491_p10) }
  0x1c   : > { %s2637_s4 = sld [smem:[#allocation18_spill]] (!%p491_p10) }
  0x1d   : > { %v1995_v2 = vld [vmem:[%s2633_s1] sm:$0xff] (!%p491_p10)   ;;  %v1996_v4 = vld [vmem:[%s2633_s1 + $0x8] sm:$0xff] (!%p491_p10)   ;;  %s1770_s1 = sshll.u32 (!%p491_p10), %s2129_s28, 8 }
  0x1e   : > { %1811 = vmatpush3.bf16.msra.mxu1 (!%p491_p10), %v1995_v2 }
  0x1f   : > { %1812 = vmatprep.subr.bf16.mxu1 %v2139_v3  ;;  %s545_s30 = scalar_select %p544_p11, %s2129_s28, 1  ;;  %v1725_v7 = vld [vmem:[%s2635_s2] ss:$0 sm:$0xff] }
  0x21   : > { %s1724_s17 = sshll.u32 %s545_s30, 3  ;;  %s2142_s30 = smov 96  }
  0x22   : > { %1813 = vmatpush3.bf16.msra.mxu1 %v1996_v4  ;;  %s547_s0 = scalar_lea.vmem %s2634_s23, %s1724_s17  ;;  %s2143_s17 = smov 80  }
  0x23   : > { %1818 = vmatprep.subr.bf16.mxu1 %v2139_v3  ;;  %v2321_v5 = vld [vmem:[%s547_s0] sm:$0xff]  ;;  %s2141_s0 = smov 120   ;;  %s2146_s23 = smov 72  }
  0x24   : > { %v554_v6 = vpack.c.bf16 %v2321_v5, %v2321_v5 }
  0x26   : > { %1815 = vmatmul.mubr.msk.bf16.vlgmr.msra.gmra.mrb[0].mxu1 %vm578_vm1, %v554_v6 }
  0x27   : > { %1820 = vmatprep.mubr.msk.bf16.mxu1 %vm2140_vm0, %v2139_v3 }
  0xf9   : > { %v616_v8 = vpop.f32.mrb[0].mxu1 }
  0xfa   : > { %v617_v9 = vadd.f32 %v1725_v7, %v616_v8  ;;  %v1816_v10 = vpop.f32.mrb[1].mxu1 }
  0xfb   : > { %v619_v11 = vpop.f32.mrb[2].mxu1 }
  0xfc   : > { %v2331_v12 = vpack.c.bf16 %v617_v9, %v617_v9  ;;  %v1817_v13 = vpop.f32.mrb[3].mxu1 }
  0xfe   : > { %636 = vrot.lane.b32.xlu1 %v2331_v12, %s2141_s0  ;;  %628 = vrot.lane.b32.xlu0 %v2331_v12, %s2142_s30  ;;  %624 = vst.msk [vmem:[#allocation2] sm:$0xf] %vm623_vm2, %v2331_v12  ;;  %s2624_s0 = smov 64   ;;  %s2150_s30 = smov 48  }
 0x102   : > { %656 = vrot.lane.b32.xlu1 %v2331_v12, %s2143_s17  ;;  %641 = vrot.lane.b32.xlu0 %v2331_v12, %s2144_s19  ;;  %s2151_s17 = smov 40   ;;  %s2389_s19 = sand.u32 1, %s2121_s26  }
 0x105   : > { %v686_v24 = vld [vmem:[#allocation2] sm:$0xf] }
 0x106   : > { %651 = vrot.lane.b32.xlu1 %v2331_v12, %s2145_s22  ;;  %671 = vrot.lane.b32.xlu0 %v2331_v12, %s2146_s23  ;;  %s1723_s22 = sshll.u32 %s2389_s19, 4 }
 0x107   : > { %s2393_s23 = scalar_lea.vmem [#allocation9], %s1723_s22 }
 0x10a   : > { %666 = vrot.lane.b32.xlu0 %v2331_v12, %s2147_s24 }
 0x170   : > { %v637_v14 = vpop.permute.xlu1 %636  ;;  %v629_v15 = vpop.permute.xlu0 %628 }
 0x171   : > { %640 = vst.msk [vmem:[#allocation2 + $0x4] sm:$0xf] %vm623_vm2, %v637_v14  ;;  %631 = vst.msk [vmem:[#allocation3] sm:$0xf] %vm623_vm2, %v629_v15 }
 0x174   : > { %v657_v16 = vpop.permute.xlu1 %656  ;;  %v642_v17 = vpop.permute.xlu0 %641 }
 0x175   : > { %660 = vst.msk [vmem:[#allocation3 + $0x8] sm:$0xf] %vm623_vm2, %v657_v16  ;;  %645 = vst.msk [vmem:[#allocation3 + $0x4] sm:$0xf] %vm623_vm2, %v642_v17 }
 0x178   : > { %v652_v18 = vpop.permute.xlu1 %651  ;;  %v672_v19 = vpop.permute.xlu0 %671  ;;  %v690_v20 = vld [vmem:[#allocation3] sm:$0xf]  ;;  %v687_v29 = vld [vmem:[#allocation2 + $0x4] sm:$0xf] }
 0x179   : > { %655 = vst.msk [vmem:[#allocation2 + $0x8] sm:$0xf] %vm623_vm2, %v652_v18  ;;  %675 = vst.msk [vmem:[#allocation3 + $0xc] sm:$0xf] %vm623_vm2, %v672_v19  ;;  %v703_v21 = vsel %vm698_vm3, %v690_v20, 0 }
 0x17a   : > { %1819 = vmatpush3.bf16.xpose.msra.mxu1 %v703_v21 }
 0x17b   : > { %1824 = vmatprep.subr.bf16.mxu1 %v2139_v3 }
 0x17c   : > { %v667_v22 = vpop.permute.xlu0 %666  ;;  %v691_v23 = vld [vmem:[#allocation3 + $0x4] sm:$0xf]  ;;  %v692_v28 = vld [vmem:[#allocation3 + $0x8] sm:$0xf] }
 0x17d   : > { %670 = vst.msk [vmem:[#allocation2 + $0xc] sm:$0xf] %vm623_vm2, %v667_v22  ;;  %v749_v26 = vsel %vm698_vm3, %v691_v23, 0  ;;  %v795_v31 = vsel %vm698_vm3, %v692_v28, 0 }
 0x180   : > { %v693_v25 = vld [vmem:[#allocation3 + $0xc] sm:$0xf]  ;;  %v688_v32 = vld [vmem:[#allocation2 + $0x8] sm:$0xf] }
 0x181   : > { %1821 = vmatmul.mubr.msk.bf16.vlgmr.msra.gmra.mrb[4].mxu1 %vm698_vm3, %v686_v24  ;;  %v841_v27 = vsel %vm698_vm3, %v693_v25, 0 }
 0x182   : > { %1825 = vmatpush3.bf16.xpose.msra.mxu1 %v749_v26  ;;  %1837 = vmatpush3.bf16.xpose.msra.mxu0 %v841_v27 }
 0x183   : > { %1826 = vmatprep.mubr.msk.bf16.mxu1 %vm2140_vm0, %v2139_v3  ;;  %1830 = vmatprep.subr.bf16.mxu1 %v2139_v3 }
 0x184   : > { %1848 = vmatprep.subr.bf16.mxu0 %v2139_v3  ;;  %v689_v30 = vld [vmem:[#allocation2 + $0xc] sm:$0xf] }
 0x189   : > { %1827 = vmatmul.mubr.msk.bf16.vlgmr.msra.gmra.mrb[8].mxu1 %vm698_vm3, %v687_v29  ;;  %1839 = vmatmul.mubr.msk.bf16.vlgmr.msra.gmra.mrb[0].mxu0 %vm698_vm3, %v689_v30 }
 0x18a   : > { %1831 = vmatpush3.bf16.xpose.msra.mxu1 %v795_v31  ;;  %1832 = vmatprep.mubr.msk.bf16.mxu1 %vm2140_vm0, %v2139_v3 }
 0x18b   : > { %1842 = vmatprep.subr.bf16.mxu1 %v2139_v3  ;;  %1850 = vmatprep.mubr.msk.bf16.mxu0 %vm2140_vm0, %v2139_v3 }
 0x191   : > { %1833 = vmatmul.mubr.msk.bf16.vlgmr.msra.gmra.mrb[12].mxu1 %vm698_vm3, %v688_v32 }
 0x192   : > { %1844 = vmatprep.mubr.msk.bf16.mxu1 %vm2140_vm0, %v2139_v3 }
 0x254   : > { %v739_v33 = vpop.f32.mrb[4].mxu1 }
 0x255   : > { %v883_v34 = vmul.f32 0.35355338, %v739_v33  ;;  %v1822_v35 = vpop.f32.mrb[5].mxu1 }
 0x256   : > { %v742_v36 = vpop.f32.mrb[6].mxu1 }
 0x257   : > { %v1823_v37 = vpop.f32.mrb[7].mxu1  ;;  %v887_v38 = vsel %vm698_vm3, %v883_v34, -inf }
 0x258   : > { %888 = vmax.xlane.f32.xlu1 %v887_v38 }
 0x25c   : > { %v785_v39 = vpop.f32.mrb[8].mxu1  ;;  %v877_v40 = vpop.f32.mrb[0].mxu0 }
 0x25d   : > { %v884_v41 = vmul.f32 0.35355338, %v785_v39  ;;  %v886_v42 = vmul.f32 0.35355338, %v877_v40  ;;  %v1828_v43 = vpop.f32.mrb[9].mxu1  ;;  %v1840_v44 = vpop.f32.mrb[1].mxu0 }
 0x25e   : > { %v788_v45 = vpop.f32.mrb[10].mxu1  ;;  %v880_v46 = vpop.f32.mrb[2].mxu0  ;;  %v1129_v43 = vld [vmem:[%s2636_s3] sm:$0xf] }
 0x25f   : > { %v1829_v47 = vpop.f32.mrb[11].mxu1  ;;  %v1841_v48 = vpop.f32.mrb[3].mxu0  ;;  %v896_v49 = vsel %vm698_vm3, %v886_v42, -inf  ;;  %v890_v50 = vsel %vm698_vm3, %v884_v41, -inf  ;;  %v1137_v44 = vsel %vm943_vm4, %v1129_v43, 0 }
 0x260   : > { %897 = vmax.xlane.f32.xlu1 %v896_v49  ;;  %891 = vmax.xlane.f32.xlu0 %v890_v50  ;;  %v1130_v45 = vld [vmem:[%s2636_s3 + $0x4] sm:$0xf]  ;;  %v1743_v47 = vld [vmem:[#allocation5] ss:$0 sm:$0xff]  ;;  %v2152_v48 = vmov 0  }
 0x261   : > { %v1183_v46 = vsel %vm943_vm4, %v1130_v45, 0  ;;  %1993 = vset.pattern.permute.xlu1 %v2152_v48  ;;  %1994 = vset.pattern.permute.xlu0 %v2152_v48  ;;  %v1131_v49 = vld [vmem:[%s2636_s3 + $0x8] sm:$0xf] }
 0x264   : > { %v831_v51 = vpop.f32.mrb[12].mxu1 }
 0x265   : > { %v885_v52 = vmul.f32 0.35355338, %v831_v51  ;;  %v1834_v53 = vpop.f32.mrb[13].mxu1 }
 0x266   : > { %v834_v54 = vpop.f32.mrb[14].mxu1  ;;  %v1229_v53 = vsel %vm943_vm4, %v1131_v49, 0  ;;  %v1745_v49 = vld [vmem:[%s2617_s11] ss:$0 sm:$0xff] }
 0x267   : > { %v1835_v55 = vpop.f32.mrb[15].mxu1  ;;  %v893_v56 = vsel %vm698_vm3, %v885_v52, -inf }
 0x268   : > { %894 = vmax.xlane.f32.xlu0 %v893_v56  ;;  %v1132_v56 = vld [vmem:[%s2636_s3 + $0xc] sm:$0xf] }
 0x271   : > { %646 = vrot.lane.b32.xlu1 %v2331_v12, %s2148_s12  ;;  %s2153_s12 = smov [#allocation9]  }
 0x272   : > { %s2031_s3 = sshll.u32 %s2153_s12, 4  ;;  %s2032_s3 = int_to_ptr.vmem [resolvable:$false] %s2031_s3 }
 0x27e   : > { %632 = vrot.lane.b32.xlu0 %v2331_v12, %s2624_s0  ;;  %s1608_s0 = sshll.u32 %s2393_s23, 4  ;;  %s2510_s0 = int_to_ptr.vmem [resolvable:$true] %s1608_s0 }
 0x27f   : > { %s2027_s24 = scalar_lea.vmem %s2510_s0, 256  ;;  %p2034_p1 = scmp.lt.s32.totalorder %s2510_s0, %s2032_s3 }
 0x280   : > { %p2028_p12 = scmp.ne.s32.totalorder %s2510_s0, %s2027_s24 }
 0x282   : > { %p2029_p13 = pnand %p2028_p12, %p2287_p4 }
 0x284   : > { %p2030_p0 = pneg %p2029_p13 }
 0x2e5   : > { %v889_v57 = vpop.xlane.xlu1 %888 }
 0x2e6   : > { %v899_v58 = vsub.f32 %v883_v34, %v889_v57 }
 0x2e8   : > { %v903_v59 = vmul.f32 1.442695, %v899_v58 }
 0x2ea   : > { %2007 = vpow2.f32 %v903_v59 }
 0x2ed   : > { %v898_v60 = vpop.xlane.xlu1 %897  ;;  %v892_v61 = vpop.xlane.xlu0 %891 }
 0x2ee   : > { %v902_v62 = vsub.f32 %v886_v42, %v898_v60  ;;  %v900_v63 = vsub.f32 %v884_v41, %v892_v61  ;;  %v1275_v60 = vsel %vm943_vm4, %v1132_v56, 0 }
 0x2f0   : > { %v909_v0 = vmul.f32 1.442695, %v902_v62  ;;  %v905_v1 = vmul.f32 1.442695, %v900_v63 }
 0x2f1   : > { %v647_v2 = vpop.permute.xlu1 %646 }
 0x2f2   : > { %2009 = vpow2.f32 %v909_v0  ;;  %650 = vst.msk [vmem:[#allocation4 + $0x4] sm:$0xf] %vm623_vm2, %v647_v2 }
 0x2f3   : > { %2011 = vpow2.f32 %v905_v1 }
 0x2f4   : > { %v2008_v4 = vpop.eup %2007 }
 0x2f5   : > { %v895_v6 = vpop.xlane.xlu0 %894  ;;  %v911_v7 = vsel %vm698_vm3, %v2008_v4, 0.0 }
 0x2f6   : > { %v901_v8 = vsub.f32 %v885_v52, %v895_v6  ;;  %912 = vadd.xlane.f32.xlu0 %v911_v7 }
 0x2f8   : > { %v907_v9 = vmul.f32 1.442695, %v901_v8 }
 0x2f9   : > { %v633_v10 = vpop.permute.xlu0 %632  ;;  %v695_v11 = vld [vmem:[#allocation4 + $0x4] sm:$0xf] }
 0x2fa   : > { %2013 = vpow2.f32 %v907_v9  ;;  %635 = vst.msk [vmem:[#allocation4] sm:$0xf] %vm623_vm2, %v633_v10  ;;  %v991_v13 = vsel %vm943_vm4, %v695_v11, 0  ;;  %v1997_v11 = vld [vmem:[%s2611_s5] sm:$0xff]  }
 0x2fb   : > { %1849 = vmatpush3.bf16.msra.mxu0 %v991_v13  ;;  %v1998_v13 = vld [vmem:[%s2611_s5 + $0x8] sm:$0xff]  }
 0x2fc   : > { %v2010_v14 = vpop.eup %2009  ;;  %1860 = vmatprep.subr.bf16.mxu0 %v2139_v3 }
 0x2fd   : > { %v920_v15 = vsel %vm698_vm3, %v2010_v14, 0.0  ;;  %v2012_v16 = vpop.eup %2011 }
 0x2fe   : > { %921 = vadd.xlane.f32.xlu1 %v920_v15  ;;  %v914_v17 = vsel %vm698_vm3, %v2012_v16, 0.0  ;;  %v2000_v15 = vld [vmem:[%s2613_s7 + $0x8] sm:$0xff]  }
 0x301   : > { %v694_v18 = vld [vmem:[#allocation4] sm:$0xf] }
 0x302   : > { %915 = vadd.xlane.f32.xlu1 %v914_v17  ;;  %v945_v19 = vsel %vm943_vm4, %v694_v18, 0  ;;  %v2002_v17 = vld [vmem:[%s2613_s7 + $0x18] sm:$0xff]   ;;  %v2003_v18 = vld [vmem:[%s2613_s7 + $0x20] sm:$0xff]  }
 0x303   : > { %1843 = vmatpush3.bf16.msra.mxu1 %v945_v19  ;;  %v2004_v19 = vld [vmem:[%s2613_s7 + $0x28] sm:$0xff]  }
 0x304   : > { %v2014_v20 = vpop.eup %2013  ;;  %1854 = vmatprep.subr.bf16.mxu1 %v2139_v3 }
 0x305   : > { %v917_v21 = vsel %vm698_vm3, %v2014_v20, 0.0 }
 0x306   : > { %918 = vadd.xlane.f32.xlu0 %v917_v21 }
 0x313   : > { %661 = vrot.lane.b32.xlu1 %v2331_v12, %s2150_s30 }
 0x317   : > { %1345 = vperm.xlu1 %1993, %v1743_v47   ;;  %v1744_v47 = vld [vmem:[%s2616_s10] ss:$0 sm:$0xff] }
 0x31c   : > { %676 = vrot.lane.b32.xlu0 %v2331_v12, %s2151_s17  ;;  %s2515_s17 = scalar_lea.hbm %s2621_s16, %s1770_s1 }
 0x383   : > { %v913_v22 = vpop.xlane.xlu0 %912 }
 0x384   : > { %2015 = vrcp.f32 %v913_v22 }
 0x38b   : > { %v922_v23 = vpop.xlane.xlu1 %921 }
 0x38c   : > { %2017 = vrcp.f32 %v922_v23 }
 0x38e   : > { %v2016_v24 = vpop.eup %2015 }
 0x38f   : > { %v924_v25 = vmul.f32 %v2016_v24, %v2008_v4  ;;  %v916_v26 = vpop.xlane.xlu1 %915 }
 0x390   : > { %2019 = vrcp.f32 %v916_v26 }
 0x391   : > { %v931_v27 = vpack.c.bf16 %v924_v25, %v924_v25 }
 0x393   : > { %v662_v28 = vpop.permute.xlu1 %661  ;;  %1845 = vmatmul.mubr.msk.bf16.vlgmr.msra.gmra.mrb[16].mxu1 %vm698_vm3, %v931_v27  ;;  %v919_v29 = vpop.xlane.xlu0 %918  ;;  %936 = vst.msk [vmem:[%s2393_s23] sm:$0xf] %vm623_vm2, %v931_v27 }
 0x394   : > { %665 = vst.msk [vmem:[#allocation4 + $0x8] sm:$0xf] %vm623_vm2, %v662_v28  ;;  %2021 = vrcp.f32 %v919_v29  ;;  %1856 = vmatprep.mubr.msk.bf16.mxu1 %vm2140_vm0, %v2139_v3 }
 0x396   : > { %v2018_v12 = vpop.eup %2017 }
 0x397   : > { %v930_v30 = vmul.f32 %v2018_v12, %v2010_v14  ;;  %v677_v31 = vpop.permute.xlu0 %676  ;;  %v1999_v14 = vld [vmem:[%s2613_s7] sm:$0xff]  }
 0x398   : > { %680 = vst.msk [vmem:[#allocation4 + $0xc] sm:$0xf] %vm623_vm2, %v677_v31 }
 0x399   : > { %v934_v32 = vpack.c.bf16 %v930_v30, %v930_v30 }
 0x39a   : > { %v2020_v33 = vpop.eup %2019 }
 0x39b   : > { %v926_v34 = vmul.f32 %v2020_v33, %v2012_v16  ;;  %v696_v35 = vld [vmem:[#allocation4 + $0x8] sm:$0xf]  ;;  %939 = vst.msk [vmem:[%s2393_s23 + $0xc] sm:$0xf] %vm623_vm2, %v934_v32  ;;  %v2001_v16 = vld [vmem:[%s2613_s7 + $0x10] sm:$0xff]  }
 0x39c   : > { %v1037_v36 = vsel %vm943_vm4, %v696_v35, 0 }
 0x39d   : > { %1855 = vmatpush3.bf16.msra.mxu1 %v1037_v36  ;;  %v932_v37 = vpack.c.bf16 %v926_v34, %v926_v34 }
 0x39e   : > { %v2022_v38 = vpop.eup %2021  ;;  %1866 = vmatprep.subr.bf16.mxu1 %v2139_v3 }
 0x39f   : > { %v928_v39 = vmul.f32 %v2022_v38, %v2014_v20  ;;  %1851 = vmatmul.mubr.msk.bf16.vlgmr.msra.gmra.mrb[4].mxu0 %vm698_vm3, %v932_v37  ;;  %v697_v40 = vld [vmem:[#allocation4 + $0xc] sm:$0xf]  ;;  %937 = vst.msk [vmem:[%s2393_s23 + $0x4] sm:$0xf] %vm623_vm2, %v932_v37  ;;  %v1742_v38 = vld [vmem:[%s2637_s4] ss:$0 sm:$0xff] }
 0x3a0   : > { %v1083_v41 = vsel %vm943_vm4, %v697_v40, 0  ;;  %1862 = vmatprep.mubr.msk.bf16.mxu0 %vm2140_vm0, %v2139_v3 }
 0x3a1   : > { %1861 = vmatpush3.bf16.msra.mxu0 %v1083_v41  ;;  %v933_v42 = vpack.c.bf16 %v928_v39, %v928_v39 }
 0x3a2   : > { %1872 = vmatprep.subr.bf16.mxu0 %v2139_v3 }
 0x3a3   : > { %1857 = vmatmul.mubr.msk.bf16.vlgmr.msra.gmra.mrb[20].mxu1 %vm698_vm3, %v933_v42  ;;  %938 = vst.msk [vmem:[%s2393_s23 + $0x8] sm:$0xf] %vm623_vm2, %v933_v42  ;;  %s2033_s23 = scalar_lea.vmem %s2032_s3, 512 }
 0x3a4   : > { %1868 = vmatprep.mubr.msk.bf16.mxu1 %vm2140_vm0, %v2139_v3  ;;  %1867 = vmatpush3.bf16.msra.mxu1 %v1137_v44  ;;  %v1346_v44 = vpop.permute.xlu1 %1345  ;;  %p2035_p2 = scmp.lt.s32.totalorder %s2033_s23, %s2027_s24 }
 0x3a5   : > { %1878 = vmatprep.subr.bf16.mxu1 %v2139_v3 }
 0x3a6   : > { %p2036_p3 = por %p2035_p2, %p2034_p1 }
 0x3a7   : > { %1863 = vmatmul.mubr.msk.bf16.vlgmr.msra.gmra.mrb[8].mxu0 %vm698_vm3, %v934_v32 }
 0x3a8   : > { %1874 = vmatprep.mubr.msk.bf16.mxu0 %vm2140_vm0, %v2139_v3  ;;  %1873 = vmatpush3.bf16.msra.mxu0 %v1183_v46  ;;  %p2037_p5 = pnand %p2036_p3, %p2030_p0 }
 0x3a9   : > { %1884 = vmatprep.subr.bf16.mxu0 %v2139_v3 }
 0x466   : > { %v981_v50 = vpop.f32.mrb[16].mxu1 }
 0x467   : > { %v1125_v51 = vpack.c.bf16 %v981_v50, %v981_v50  ;;  %v1846_v52 = vpop.f32.mrb[17].mxu1 }
 0x468   : > { %v984_v54 = vpop.f32.mrb[18].mxu1 }
 0x469   : > { %v1847_v55 = vpop.f32.mrb[19].mxu1  ;;  %1869 = vmatmul.mubr.msk.bf16.vlgmr.msra.gmra.mrb[24].mxu1 %vm698_vm3, %v1125_v51  ;;  %v1759_v54 = vld [vmem:[#allocation6] ss:$0 sm:$0xff] }
 0x46a   : > { %1879 = vmatpush3.bf16.msra.mxu1 %v1229_v53  ;;  %1880 = vmatprep.mubr.msk.bf16.mxu1 %vm2140_vm0, %v2139_v3  ;;  %v2006_v53 = vld [vmem:[%s2613_s7 + $0x38] sm:$0xff]   ;;  %v1746_v55 = vld [vmem:[%s2612_s6] ss:$0 sm:$0xff] }
 0x46b   : > { %1890 = vmatprep.subr.bf16.mxu1 %v2139_v3  ;;  %1554 = vperm.xlu0 %1994, %v1759_v54  }
 0x472   : > { %v1027_v57 = vpop.f32.mrb[4].mxu0 }
 0x473   : > { %v1126_v58 = vpack.c.bf16 %v1027_v57, %v1027_v57  ;;  %v1852_v59 = vpop.f32.mrb[5].mxu0 }
 0x474   : > { %v1030_v61 = vpop.f32.mrb[6].mxu0 }
 0x475   : > { %v1853_v62 = vpop.f32.mrb[7].mxu0  ;;  %1875 = vmatmul.mubr.msk.bf16.vlgmr.msra.gmra.mrb[12].mxu0 %vm698_vm3, %v1126_v58 }
 0x476   : > { %v1073_v63 = vpop.f32.mrb[20].mxu1  ;;  %1885 = vmatpush3.bf16.msra.mxu0 %v1275_v60  ;;  %1886 = vmatprep.mubr.msk.bf16.mxu0 %vm2140_vm0, %v2139_v3 }
 0x477   : > { %v1127_v0 = vpack.c.bf16 %v1073_v63, %v1073_v63  ;;  %v1858_v1 = vpop.f32.mrb[21].mxu1  ;;  %1898 = vmatprep.subr.bf16.mxu0 %v2139_v3 }
 0x478   : > { %v1076_v2 = vpop.f32.mrb[22].mxu1 }
 0x479   : > { %v1859_v4 = vpop.f32.mrb[23].mxu1  ;;  %1881 = vmatmul.mubr.msk.bf16.vlgmr.msra.gmra.mrb[28].mxu1 %vm698_vm3, %v1127_v0 }
 0x47a   : > { %v1119_v6 = vpop.f32.mrb[8].mxu0  ;;  %1894 = vmatprep.mubr.msk.bf16.mxu1 %vm2140_vm0, %v2139_v3  ;;  %1891 = vmatpush3.bf16.msra.mxu1 %v1997_v11 }
 0x47b   : > { %v1128_v7 = vpack.c.bf16 %v1119_v6, %v1119_v6  ;;  %v1864_v8 = vpop.f32.mrb[9].mxu0  ;;  %1892 = vmatprep.subr.bf16.mxu1 %v2139_v3 }
 0x47c   : > { %v1122_v9 = vpop.f32.mrb[10].mxu0 }
 0x47d   : > { %v1865_v10 = vpop.f32.mrb[11].mxu0  ;;  %1887 = vmatmul.mubr.msk.bf16.vlgmr.msra.gmra.mrb[16].mxu0 %vm698_vm3, %v1128_v7 }
 0x47e   : > { %1914 = vmatprep.mubr.msk.bf16.mxu0 %vm2140_vm0, %v2139_v3  ;;  %1893 = vmatpush3.bf16.msra.mxu1 %v1998_v13 }
 0x47f   : > { %1899 = vmatpush3.bf16.msra.mxu0 %v1999_v14 }
 0x480   : > { %1900 = vmatprep.subr.bf16.mxu0 %v2139_v3 }
 0x483   : > { %1901 = vmatpush3.bf16.msra.mxu0 %v2000_v15 }
 0x484   : > { %1902 = vmatprep.subr.bf16.mxu0 %v2139_v3 }
 0x487   : > { %1903 = vmatpush3.bf16.msra.mxu0 %v2001_v16 }
 0x488   : > { %1904 = vmatprep.subr.bf16.mxu0 %v2139_v3 }
 0x48b   : > { %1905 = vmatpush3.bf16.msra.mxu0 %v2002_v17 }
 0x48c   : > { %1906 = vmatprep.subr.bf16.mxu0 %v2139_v3 }
 0x48f   : > { %1907 = vmatpush3.bf16.msra.mxu0 %v2003_v18 }
 0x490   : > { %1908 = vmatprep.subr.bf16.mxu0 %v2139_v3 }
 0x493   : > { %1909 = vmatpush3.bf16.msra.mxu0 %v2004_v19 }
 0x494   : > { %1910 = vmatprep.subr.bf16.mxu0 %v2139_v3 }
 0x53c   : > { %v1173_v20 = vpop.f32.mrb[24].mxu1 }
 0x53d   : > { %v1870_v21 = vpop.f32.mrb[25].mxu1  ;;  %v1318_v25 = vsel %vm578_vm1, %v1173_v20, 0.0 }
 0x53e   : > { %v1176_v22 = vpop.f32.mrb[26].mxu1 }
 0x53f   : > { %v1871_v23 = vpop.f32.mrb[27].mxu1 }
 0x548   : > { %v1219_v24 = vpop.f32.mrb[12].mxu0 }
 0x549   : > { %v1319_v26 = vsel %vm578_vm1, %v1219_v24, 0.0  ;;  %v1876_v27 = vpop.f32.mrb[13].mxu0 }
 0x54a   : > { %v1320_v28 = vadd.f32 %v1319_v26, %v1318_v25  ;;  %v1222_v29 = vpop.f32.mrb[14].mxu0 }
 0x54b   : > { %v1877_v12 = vpop.f32.mrb[15].mxu0 }
 0x54c   : > { %v1265_v30 = vpop.f32.mrb[28].mxu1 }
 0x54d   : > { %v1321_v31 = vsel %vm578_vm1, %v1265_v30, 0.0  ;;  %v1882_v32 = vpop.f32.mrb[29].mxu1 }
 0x54e   : > { %v1322_v33 = vadd.f32 %v1321_v31, %v1320_v28  ;;  %v1268_v34 = vpop.f32.mrb[30].mxu1 }
 0x54f   : > { %v1883_v35 = vpop.f32.mrb[31].mxu1 }
 0x550   : > { %v1311_v36 = vpop.f32.mrb[16].mxu0 }
 0x551   : > { %v1323_v37 = vsel %vm578_vm1, %v1311_v36, 0.0  ;;  %v1888_v39 = vpop.f32.mrb[17].mxu0 }
 0x552   : > { %v1324_v40 = vadd.f32 %v1323_v37, %v1322_v33  ;;  %v1314_v41 = vpop.f32.mrb[18].mxu0 }
 0x553   : > { %v1889_v42 = vpop.f32.mrb[19].mxu0 }
 0x554   : > { %v1332_v43 = vadd.f32 %v1742_v38, %v1324_v40 }
 0x556   : > { %v1335_v45 = vadd.f32 %v1332_v43, %v2321_v5  ;;  %v2005_v5 = vld [vmem:[%s2613_s7 + $0x30] sm:$0xff]  }
 0x557   : > { %1911 = vmatpush3.bf16.msra.mxu0 %v2005_v5 }
 0x558   : > { %v1348_v46 = vmul.f32 %v1346_v44, %v1335_v45  ;;  %1912 = vmatprep.subr.bf16.mxu0 %v2139_v3 }
 0x55a   : > { %2023 = vtanh.f32 %v1348_v46 }
 0x55b   : > { %1913 = vmatpush3.bf16.msra.mxu0 %v2006_v53 }
 0x564   : > { %v2024_v48 = vpop.eup %2023 }
 0x565   : > { %v1356_v50 = vmul.f32 %v2024_v48, %v1744_v47 }
 0x567   : > { %v1363_v51 = vadd.f32 %v1745_v49, %v1356_v50 }
 0x569   : > { %v1364_v52 = vpack.c.bf16 %v1363_v51, %v1363_v51 }
 0x56b   : > { %1895 = vmatmul.mubr.msk.bf16.vlgmr.msra.gmra.mrb[32].mxu1 %vm578_vm1, %v1364_v52 }
 0x63e   : > { %v1425_v56 = vpop.f32.mrb[32].mxu1 }
 0x63f   : > { %v1426_v57 = vadd.f32 %v1746_v55, %v1425_v56  ;;  %v1896_v58 = vpop.f32.mrb[33].mxu1 }
 0x640   : > { %v1428_v59 = vpop.f32.mrb[34].mxu1 }
 0x641   : > { %v1431_v60 = vmax.f32 %v1426_v57, 0.0  ;;  %v1897_v61 = vpop.f32.mrb[35].mxu1 }
 0x643   : > { %v1432_v3 = vpack.c.bf16 %v1431_v60, %v1431_v60 }
 0x645   : > { %1915 = vmatmul.mubr.bf16.vlgmr.msra.gmra.mrb[20].mxu0 %v1432_v3 }
 0x646   : > { %2040 = shalt.err (!%p2037_p5)
}
 0x647   : > { %s2041_s1 = scalar_lea.hbm %s2515_s17, 256  ;;  %s2045_s12 = scalar_lea.hbm %s2621_s16, 512 }
 0x648   : > { %p2042_p6 = scmp.ne.s32.totalorder %s2515_s17, %s2041_s1  ;;  %p2046_p10 = scmp.lt.u32.totalorder %s2515_s17, %s2621_s16 }
 0x649   : > { %p2047_p11 = scmp.lt.u32.totalorder %s2045_s12, %s2041_s1  ;;  %p2049_p13 = scmp.lt.u32.totalorder %s2041_s1, %s2515_s17 }
 0x64a   : > { %p2043_p7 = pnand %p2042_p6, %p2287_p4 }
 0x64b   : > { %p2048_p12 = por %p2047_p11, %p2046_p10 }
 0x64c   : > { %p2044_p9 = pneg %p2043_p7 }
 0x64d   : > { %p2050_p0 = por %p2049_p13, %p2048_p12 }
 0x64f   : > { %p2051_p1 = pnand %p2050_p0, %p2044_p9 }
 0x651   : > { %2054 = shalt.err (!%p2051_p1)
}
 0x652   : > { %s2154_s24 = smov 4   ;;  %s2638_s23 = smov 64   ;;  %v1750_v62 = vld [vmem:[%s2614_s8] ss:$0 sm:$0xff]  ;;  %v1555_v4 = vpop.permute.xlu0 %1554 }
 0x653   : > { %s2639_s4 = scalar_lea.sflag [#allocation10], %s2389_s19  ;;  %s1722_s1 = sshll.u32 %s2389_s19, 3  ;;  %v1760_v9 = vld [vmem:[%s2618_s13] ss:$0 sm:$0xff] }
 0x654   : > { %1919 = dma.vmem_to_hbm [thread:$0]  (%p2287_p4), %s2510_s0, 256, %s2515_s17, %s2639_s4, %s2638_s23, %s2638_s23, %s2154_s24  }
 0x655   : > { %v1761_v11 = vld [vmem:[%s2619_s14] ss:$0 sm:$0xff]  ;;  %s1764_s17 = sshll.u32 %s2129_s28, 7  ;;  %s536_s3 = scalar_lea.vmem [#allocation7], %s1722_s1 }
 0x656   : > { %s1594_s24 = sshll.u32 %s536_s3, 4  ;;  %s2557_s2 = scalar_lea.hbm %s2620_s15, %s1764_s17  ;;  %s2559_s24 = int_to_ptr.vmem [resolvable:$true] %s1594_s24 }
 0x657   : > { %s1575_s30 = scalar_lea.sflag [#allocation8], %s2389_s19  ;;  %s2055_s12 = scalar_lea.vmem %s2559_s24, 128 }
 0x658   : > { %p2056_p2 = scmp.ne.s32.totalorder %s2559_s24, %s2055_s12  ;;  %s2155_s28 = smov [#allocation7]  }
 0x659   : > { %s2059_s1 = sshll.u32 %s2155_s28, 4  ;;  %s2060_s1 = int_to_ptr.vmem [resolvable:$false] %s2059_s1 }
 0x65a   : > { %p2057_p3 = pnand %p2056_p2, %p2287_p4  ;;  %s2061_s4 = scalar_lea.vmem %s2060_s1, 256 }
 0x65b   : > { %p2062_p6 = scmp.lt.s32.totalorder %s2559_s24, %s2060_s1  ;;  %p2063_p7 = scmp.lt.s32.totalorder %s2061_s4, %s2055_s12 }
 0x65c   : > { %p2058_p5 = pneg %p2057_p3 }
 0x65d   : > { %p2064_p9 = por %p2063_p7, %p2062_p6 }
 0x65f   : > { %p2065_p10 = pnand %p2064_p9, %p2058_p5 }
 0x718   : > { %v1538_v63 = vpop.f32.mrb[20].mxu0 }
 0x719   : > { %v1539_v0 = vadd.f32 %v1750_v62, %v1538_v63  ;;  %v1916_v1 = vpop.f32.mrb[21].mxu0 }
 0x71a   : > { %v1541_v2 = vpop.f32.mrb[22].mxu0 }
 0x71b   : > { %v1917_v6 = vpop.f32.mrb[23].mxu0  ;;  %v1544_v7 = vadd.f32 %v1539_v0, %v1363_v51 }
 0x71d   : > { %v1557_v8 = vmul.f32 %v1555_v4, %v1544_v7 }
 0x71f   : > { %2025 = vtanh.f32 %v1557_v8 }
 0x729   : > { %v2026_v10 = vpop.eup %2025 }
 0x72a   : > { %v1565_v13 = vmul.f32 %v2026_v10, %v1760_v9 }
 0x72c   : > { %v1572_v14 = vadd.f32 %v1761_v11, %v1565_v13 }
 0x72e   : > { %1573 = vst.msk [vmem:[%s536_s3] sm:$0xff] %vm578_vm1, %v1572_v14 }
 0x72f   : > { %2068 = shalt.err (!%p2065_p10)
}
 0x730   : > { %s2069_s19 = scalar_lea.hbm %s2557_s2, 128  ;;  %s2073_s3 = scalar_lea.hbm %s2620_s15, 256 }
 0x731   : > { %p2070_p11 = scmp.ne.s32.totalorder %s2557_s2, %s2069_s19  ;;  %p2074_p0 = scmp.lt.u32.totalorder %s2557_s2, %s2620_s15 }
 0x732   : > { %p2075_p1 = scmp.lt.u32.totalorder %s2073_s3, %s2069_s19  ;;  %p2077_p3 = scmp.lt.u32.totalorder %s2069_s19, %s2557_s2 }
 0x733   : > { %p2071_p12 = pnand %p2070_p11, %p2287_p4 }
 0x734   : > { %p2076_p2 = por %p2075_p1, %p2074_p0 }
 0x735   : > { %p2072_p13 = pneg %p2071_p12 }
 0x736   : > { %p2078_p5 = por %p2077_p3, %p2076_p2 }
 0x738   : > { %p2079_p6 = pnand %p2078_p5, %p2072_p13 }
 0x73a   : > { %2082 = shalt.err (!%p2079_p6)
}
 0x73b   : > { %1918 = dma.vmem_to_hbm [thread:$0]  (%p2287_p4), %s2559_s24, 128, %s2557_s2, %s1575_s30  }
 0x73c PF: > { %p1929_p7 = scmp.ge.s32.totalorder %s2137_s9, 2  ;;  %s1623_s12 = sand.u32 1, %s2117_s25  }
 0x73d   : > { %s1624_s28 = scalar_lea.sflag [#allocation8], %s1623_s12 }
 0x73e   : > { %p1923_p9 = pnand %p1929_p7, %p2294_p8 }
 0x740   : > { %2108 = dma.done.wait (!%p1923_p9), %s1624_s28, 128  }
 0x741   : > { %2110 = vsyncadd (!%p1923_p9), %s1624_s28, 4294967168  ;;  %s1633_s1 = scalar_lea.sflag [#allocation10], %s1623_s12 }
 0x742   : > { %2112 = dma.done.wait (!%p1923_p9), %s1633_s1, 256  }
 0x743   : > { %2114 = vsyncadd (!%p1923_p9), %s1633_s1, 4294967040  ;;  %s37_s9 = sadd.s32 1, %s2137_s9   ;;  %s2640_s18 = sld [smem:[#allocation13_spill]] }
 0x744   : > { %p34_p10 = scmp.ge.s32.totalorder %s37_s9, 4   ;;  %s2641_s25 = smov %s2121_s26 }
 0x745   : > { %s2642_s26 = smov %s2125_s27  ;;  %s2643_s27 = smov %s2300_s21 }
 0x746   : > { %s2644_s28 = smov %s2133_s29  ;;  %36 = sbr.rel (!%p34_p10) target bundleno = 12 (0xc), region = 147 }
 0x749   : > { %s2645_s29 = smov %s2640_s18 }
 0x74d   :  { %1638 = vsyncpa [#allocation8], 1 }
 0x74e   :  { %1640 = vsyncpa [#allocation8 + $0x1], 1 }
 0x74f   :  { %1641 = vsyncpa [#allocation10], 1 }
 0x750   :  { %1643 = vsyncpa [#allocation10 + $0x1], 1 }

// kernel: cross_feature_attention.1
= control target key start
LH: loop header
LB: loop body
LE: loop exit
PB: predicated region body
PF: predicated region fallthrough
CT: control target
= control target key end

     0   :  { %s2606_s0 = inlined_call_operand.vmem [shape: f32[2,8,32], index: 0, kind: input, shape index: {}]   ;;  %s2607_s1 = inlined_call_operand.vmem [shape: bf16[32,96], index: 1, kind: input, shape index: {}]   ;;  %s2608_s2 = inlined_call_operand.vmem [shape: f32[1,96], index: 2, kind: input, shape index: {}]   ;;  %s2609_s3 = inlined_call_operand.vmem [shape: bf16[4,8,32], index: 3, kind: input, shape index: {}]   ;;  %s2610_s4 = inlined_call_operand.vmem [shape: f32[1,32], index: 4, kind: input, shape index: {}]   ;;  %s2611_s5 = inlined_call_operand.vmem [shape: bf16[32,128], index: 5, kind: input, shape index: {}]   ;;  %s2612_s6 = inlined_call_operand.vmem [shape: f32[1,128], index: 6, kind: input, shape index: {}]   ;;  %s2613_s7 = inlined_call_operand.vmem [shape: bf16[128,32], index: 7, kind: input, shape index: {}]   ;;  %s2614_s8 = inlined_call_operand.vmem [shape: f32[1,32], index: 8, kind: input, shape index: {}]   ;;  %s2615_s9 = inlined_call_operand.<no memory space> [shape: f32[1,1], index: 9, kind: input, shape index: {}]   ;;  %s2616_s10 = inlined_call_operand.vmem [shape: f32[1,32], index: 10, kind: input, shape index: {}]   ;;  %s2617_s11 = inlined_call_operand.vmem [shape: f32[1,32], index: 11, kind: input, shape index: {}]   ;;  %s2618_s13 = inlined_call_operand.vmem [shape: f32[1,32], index: 13, kind: input, shape index: {}]   ;;  %s2619_s14 = inlined_call_operand.vmem [shape: f32[1,32], index: 14, kind: input, shape index: {}]   ;;  %s2620_s15 = inlined_call_operand.hbm [shape: f32[2,8,32], index: 15, kind: output, shape index: {0}]   ;;  %s2621_s16 = inlined_call_operand.hbm [shape: bf16[2,4,8,8], index: 16, kind: output, shape index: {1}]   ;;  %s2622_s12 = inlined_call_operand.<no memory space> [shape: f32[1,1], index: 12, kind: input, shape index: {}]  }
   0x1   :  { %2625 = sst [smem:[#allocation14_spill]] %s2606_s0  ;;  %v22_v0 = vstv %s2615_s9  ;;  %v24_v1 = vstv %s2622_s12 }
   0x2   :  { %2626 = sst [smem:[#allocation15_spill]] %s2607_s1  ;;  %23 = vst [vmem:[#allocation5] sm:$0x1] %v22_v0  ;;  %25 = vst [vmem:[#allocation6] sm:$0x1] %v24_v1 }
   0x3   :  { %2627 = sst [smem:[#allocation16_spill]] %s2608_s2 }
   0x4   :  { %2628 = sst [smem:[#allocation17_spill]] %s2609_s3 }
   0x5   :  { %2629 = sst [smem:[#allocation18_spill]] %s2610_s4 }
   0x6   :  { %26 = vsyncpa [#allocation8], 0 }
   0x7   :  { %28 = vsyncpa [#allocation8 + $0x1], 0 }
   0x8   :  { %29 = vsyncpa [#allocation10], 0 }
   0x9   :  { %31 = vsyncpa [#allocation10 + $0x1], 0  ;;  %s2247_s25 = smov 0   ;;  %s2249_s26 = smov 0  }
   0xa   :  { %s2251_s27 = smov 0   ;;  %s2253_s28 = smov 0  }
   0xb   :  { %s2255_s29 = smov 0   ;;  %s2257_s9 = smov 0  }
   0xc LB: > { %s1717_s12 = sadd.s32 4294967295, %s2137_s9   ;;  %s1718_s30 = sadd.s32 4294967294, %s2137_s9   ;;  %s2137_s9 = sphi %s2257_s9, %s37_s9   ;;  %s2133_s29 = sphi %s2255_s29, %s2645_s29   ;;  %s2129_s28 = sphi %s2253_s28, %s2644_s28   ;;  %s2125_s27 = sphi %s2251_s27, %s2643_s27   ;;  %s2121_s26 = sphi %s2249_s26, %s2642_s26   ;;  %s2117_s25 = sphi %s2247_s25, %s2641_s25  }
   0xd   : > { %s49_s0 = sadd.s32 1, %s2133_s29  ;;  %s378_s17 = sadd.s32 1, %s2125_s27 }
   0xe   : > { %p51_p0 = scmp.ge.s32.totalorder %s49_s0, 2  ;;  %p388_p1 = scmp.ne.s32.totalorder %s2125_s27, %s2121_s26 }
   0xf   : > { %p389_p2 = scmp.eq.s32.totalorder %s1717_s12, 1  ;;  %p394_p3 = scmp.ne.s32.totalorder %s2121_s26, %s2117_s25 }
  0x10   : > { %s2647_s0 = smov (%p51_p0, %s49_s0), 0  ;;  %p395_p5 = scmp.eq.s32.totalorder %s1718_s30, 1 }
  0x11   : > { %2630 = sst [smem:[#allocation13_spill]] %s2647_s0  ;;  %p2287_p4 = por %p389_p2, %p388_p1 }
  0x12   : > { %s373_s19 = ssub.s32 %s2133_s29, %s2647_s0  ;;  %p1721_p6 = scmp.ge.s32.totalorder %s2137_s9, 1 }
  0x13   : > { %p376_p7 = scmp.eq.s32.totalorder %s373_s19, 0  ;;  %p2294_p8 = por %p395_p5, %p394_p3 }
  0x14   : > { %p490_p9 = scmp.lt.s32.totalorder %s2137_s9, 3 }
  0x15   : > { %s2300_s21 = scalar_select %p376_p7, %s2125_s27, %s378_s17  }
  0x16   : > { %p491_p10 = pnand %p1721_p6, %p490_p9 }
  0x17   : > { %s2633_s1 = sld [smem:[#allocation15_spill]] (!%p491_p10)  ;;  %v2139_v3 = vmov (!%p491_p10), 0.0   ;;  %vm2140_vm0 = vmmov (!%p491_p10), 0   ;;  %p544_p11 = scmp.lt.s32.totalorder (!%p491_p10), %s2129_s28, 1  ;;  %vm578_vm1 = vcmask (!%p491_p10), 261120   ;;  %vm623_vm2 = vcmask (!%p491_p10), 60416  }
  0x18   : > { %494 = sbr.rel (%p491_p10) target bundleno = 1852 (0x73c), region = 80  ;;  %1810 = vmatprep.subr.bf16.mxu1 (!%p491_p10), %v2139_v3  ;;  %1836 = vmatprep.subr.bf16.mxu0 (!%p491_p10), %v2139_v3  ;;  %s2634_s23 = sld [smem:[#allocation14_spill]] (!%p491_p10)  ;;  %vm698_vm3 = vcmask (!%p491_p10), 64512   ;;  %vm943_vm4 = vcmask (!%p491_p10), 1043456  }
  0x19   : > { %1814 = vmatprep.mubr.msk.bf16.mxu1 (!%p491_p10), %vm2140_vm0, %v2139_v3  ;;  %1838 = vmatprep.mubr.msk.bf16.mxu0 (!%p491_p10), %vm2140_vm0, %v2139_v3  ;;  %s2635_s2 = sld [smem:[#allocation16_spill]] (!%p491_p10)  ;;  %s2144_s19 = smov (!%p491_p10), 88  }
  0x1a   : > { %s2145_s22 = smov (!%p491_p10), 112   ;;  %s2147_s24 = smov (!%p491_p10), 104  }
  0x1b   : > { %s2148_s12 = smov (!%p491_p10), 56   ;;  %s2636_s3 = sld [smem:[#allocation17_spill]] (!%p491_p10) }
  0x1c   : > { %s2637_s4 = sld [smem:[#allocation18_spill]] (!%p491_p10) }
  0x1d   : > { %v1995_v2 = vld [vmem:[%s2633_s1] sm:$0xff] (!%p491_p10)   ;;  %v1996_v4 = vld [vmem:[%s2633_s1 + $0x8] sm:$0xff] (!%p491_p10)   ;;  %s1770_s1 = sshll.u32 (!%p491_p10), %s2129_s28, 8 }
  0x1e   : > { %1811 = vmatpush3.bf16.msra.mxu1 (!%p491_p10), %v1995_v2 }
  0x1f   : > { %1812 = vmatprep.subr.bf16.mxu1 %v2139_v3  ;;  %s545_s30 = scalar_select %p544_p11, %s2129_s28, 1  ;;  %v1725_v7 = vld [vmem:[%s2635_s2] ss:$0 sm:$0xff] }
  0x21   : > { %s1724_s17 = sshll.u32 %s545_s30, 3  ;;  %s2142_s30 = smov 96  }
  0x22   : > { %1813 = vmatpush3.bf16.msra.mxu1 %v1996_v4  ;;  %s547_s0 = scalar_lea.vmem %s2634_s23, %s1724_s17  ;;  %s2143_s17 = smov 80  }
  0x23   : > { %1818 = vmatprep.subr.bf16.mxu1 %v2139_v3  ;;  %v2321_v5 = vld [vmem:[%s547_s0] sm:$0xff]  ;;  %s2141_s0 = smov 120   ;;  %s2146_s23 = smov 72  }
  0x24   : > { %v554_v6 = vpack.c.bf16 %v2321_v5, %v2321_v5 }
  0x26   : > { %1815 = vmatmul.mubr.msk.bf16.vlgmr.msra.gmra.mrb[0].mxu1 %vm578_vm1, %v554_v6 }
  0x27   : > { %1820 = vmatprep.mubr.msk.bf16.mxu1 %vm2140_vm0, %v2139_v3 }
  0xf9   : > { %v616_v8 = vpop.f32.mrb[0].mxu1 }
  0xfa   : > { %v617_v9 = vadd.f32 %v1725_v7, %v616_v8  ;;  %v1816_v10 = vpop.f32.mrb[1].mxu1 }
  0xfb   : > { %v619_v11 = vpop.f32.mrb[2].mxu1 }
  0xfc   : > { %v2331_v12 = vpack.c.bf16 %v617_v9, %v617_v9  ;;  %v1817_v13 = vpop.f32.mrb[3].mxu1 }
  0xfe   : > { %636 = vrot.lane.b32.xlu1 %v2331_v12, %s2141_s0  ;;  %628 = vrot.lane.b32.xlu0 %v2331_v12, %s2142_s30  ;;  %624 = vst.msk [vmem:[#allocation2] sm:$0xf] %vm623_vm2, %v2331_v12  ;;  %s2624_s0 = smov 64   ;;  %s2150_s30 = smov 48  }
 0x102   : > { %656 = vrot.lane.b32.xlu1 %v2331_v12, %s2143_s17  ;;  %641 = vrot.lane.b32.xlu0 %v2331_v12, %s2144_s19  ;;  %s2151_s17 = smov 40   ;;  %s2389_s19 = sand.u32 1, %s2121_s26  }
 0x105   : > { %v686_v24 = vld [vmem:[#allocation2] sm:$0xf] }
 0x106   : > { %651 = vrot.lane.b32.xlu1 %v2331_v12, %s2145_s22  ;;  %671 = vrot.lane.b32.xlu0 %v2331_v12, %s2146_s23  ;;  %s1723_s22 = sshll.u32 %s2389_s19, 4 }
 0x107   : > { %s2393_s23 = scalar_lea.vmem [#allocation9], %s1723_s22 }
 0x10a   : > { %666 = vrot.lane.b32.xlu0 %v2331_v12, %s2147_s24 }
 0x170   : > { %v637_v14 = vpop.permute.xlu1 %636  ;;  %v629_v15 = vpop.permute.xlu0 %628 }
 0x171   : > { %640 = vst.msk [vmem:[#allocation2 + $0x4] sm:$0xf] %vm623_vm2, %v637_v14  ;;  %631 = vst.msk [vmem:[#allocation3] sm:$0xf] %vm623_vm2, %v629_v15 }
 0x174   : > { %v657_v16 = vpop.permute.xlu1 %656  ;;  %v642_v17 = vpop.permute.xlu0 %641 }
 0x175   : > { %660 = vst.msk [vmem:[#allocation3 + $0x8] sm:$0xf] %vm623_vm2, %v657_v16  ;;  %645 = vst.msk [vmem:[#allocation3 + $0x4] sm:$0xf] %vm623_vm2, %v642_v17 }
 0x178   : > { %v652_v18 = vpop.permute.xlu1 %651  ;;  %v672_v19 = vpop.permute.xlu0 %671  ;;  %v690_v20 = vld [vmem:[#allocation3] sm:$0xf]  ;;  %v687_v29 = vld [vmem:[#allocation2 + $0x4] sm:$0xf] }
 0x179   : > { %655 = vst.msk [vmem:[#allocation2 + $0x8] sm:$0xf] %vm623_vm2, %v652_v18  ;;  %675 = vst.msk [vmem:[#allocation3 + $0xc] sm:$0xf] %vm623_vm2, %v672_v19  ;;  %v703_v21 = vsel %vm698_vm3, %v690_v20, 0 }
 0x17a   : > { %1819 = vmatpush3.bf16.xpose.msra.mxu1 %v703_v21 }
 0x17b   : > { %1824 = vmatprep.subr.bf16.mxu1 %v2139_v3 }
 0x17c   : > { %v667_v22 = vpop.permute.xlu0 %666  ;;  %v691_v23 = vld [vmem:[#allocation3 + $0x4] sm:$0xf]  ;;  %v692_v28 = vld [vmem:[#allocation3 + $0x8] sm:$0xf] }
 0x17d   : > { %670 = vst.msk [vmem:[#allocation2 + $0xc] sm:$0xf] %vm623_vm2, %v667_v22  ;;  %v749_v26 = vsel %vm698_vm3, %v691_v23, 0  ;;  %v795_v31 = vsel %vm698_vm3, %v692_v28, 0 }
 0x180   : > { %v693_v25 = vld [vmem:[#allocation3 + $0xc] sm:$0xf]  ;;  %v688_v32 = vld [vmem:[#allocation2 + $0x8] sm:$0xf] }
 0x181   : > { %1821 = vmatmul.mubr.msk.bf16.vlgmr.msra.gmra.mrb[4].mxu1 %vm698_vm3, %v686_v24  ;;  %v841_v27 = vsel %vm698_vm3, %v693_v25, 0 }
 0x182   : > { %1825 = vmatpush3.bf16.xpose.msra.mxu1 %v749_v26  ;;  %1837 = vmatpush3.bf16.xpose.msra.mxu0 %v841_v27 }
 0x183   : > { %1826 = vmatprep.mubr.msk.bf16.mxu1 %vm2140_vm0, %v2139_v3  ;;  %1830 = vmatprep.subr.bf16.mxu1 %v2139_v3 }
 0x184   : > { %1848 = vmatprep.subr.bf16.mxu0 %v2139_v3  ;;  %v689_v30 = vld [vmem:[#allocation2 + $0xc] sm:$0xf] }
 0x189   : > { %1827 = vmatmul.mubr.msk.bf16.vlgmr.msra.gmra.mrb[8].mxu1 %vm698_vm3, %v687_v29  ;;  %1839 = vmatmul.mubr.msk.bf16.vlgmr.msra.gmra.mrb[0].mxu0 %vm698_vm3, %v689_v30 }
 0x18a   : > { %1831 = vmatpush3.bf16.xpose.msra.mxu1 %v795_v31  ;;  %1832 = vmatprep.mubr.msk.bf16.mxu1 %vm2140_vm0, %v2139_v3 }
 0x18b   : > { %1842 = vmatprep.subr.bf16.mxu1 %v2139_v3  ;;  %1850 = vmatprep.mubr.msk.bf16.mxu0 %vm2140_vm0, %v2139_v3 }
 0x191   : > { %1833 = vmatmul.mubr.msk.bf16.vlgmr.msra.gmra.mrb[12].mxu1 %vm698_vm3, %v688_v32 }
 0x192   : > { %1844 = vmatprep.mubr.msk.bf16.mxu1 %vm2140_vm0, %v2139_v3 }
 0x254   : > { %v739_v33 = vpop.f32.mrb[4].mxu1 }
 0x255   : > { %v883_v34 = vmul.f32 0.35355338, %v739_v33  ;;  %v1822_v35 = vpop.f32.mrb[5].mxu1 }
 0x256   : > { %v742_v36 = vpop.f32.mrb[6].mxu1 }
 0x257   : > { %v1823_v37 = vpop.f32.mrb[7].mxu1  ;;  %v887_v38 = vsel %vm698_vm3, %v883_v34, -inf }
 0x258   : > { %888 = vmax.xlane.f32.xlu1 %v887_v38 }
 0x25c   : > { %v785_v39 = vpop.f32.mrb[8].mxu1  ;;  %v877_v40 = vpop.f32.mrb[0].mxu0 }
 0x25d   : > { %v884_v41 = vmul.f32 0.35355338, %v785_v39  ;;  %v886_v42 = vmul.f32 0.35355338, %v877_v40  ;;  %v1828_v43 = vpop.f32.mrb[9].mxu1  ;;  %v1840_v44 = vpop.f32.mrb[1].mxu0 }
 0x25e   : > { %v788_v45 = vpop.f32.mrb[10].mxu1  ;;  %v880_v46 = vpop.f32.mrb[2].mxu0  ;;  %v1129_v43 = vld [vmem:[%s2636_s3] sm:$0xf] }
 0x25f   : > { %v1829_v47 = vpop.f32.mrb[11].mxu1  ;;  %v1841_v48 = vpop.f32.mrb[3].mxu0  ;;  %v896_v49 = vsel %vm698_vm3, %v886_v42, -inf  ;;  %v890_v50 = vsel %vm698_vm3, %v884_v41, -inf  ;;  %v1137_v44 = vsel %vm943_vm4, %v1129_v43, 0 }
 0x260   : > { %897 = vmax.xlane.f32.xlu1 %v896_v49  ;;  %891 = vmax.xlane.f32.xlu0 %v890_v50  ;;  %v1130_v45 = vld [vmem:[%s2636_s3 + $0x4] sm:$0xf]  ;;  %v1743_v47 = vld [vmem:[#allocation5] ss:$0 sm:$0xff]  ;;  %v2152_v48 = vmov 0  }
 0x261   : > { %v1183_v46 = vsel %vm943_vm4, %v1130_v45, 0  ;;  %1993 = vset.pattern.permute.xlu1 %v2152_v48  ;;  %1994 = vset.pattern.permute.xlu0 %v2152_v48  ;;  %v1131_v49 = vld [vmem:[%s2636_s3 + $0x8] sm:$0xf] }
 0x264   : > { %v831_v51 = vpop.f32.mrb[12].mxu1 }
 0x265   : > { %v885_v52 = vmul.f32 0.35355338, %v831_v51  ;;  %v1834_v53 = vpop.f32.mrb[13].mxu1 }
 0x266   : > { %v834_v54 = vpop.f32.mrb[14].mxu1  ;;  %v1229_v53 = vsel %vm943_vm4, %v1131_v49, 0  ;;  %v1745_v49 = vld [vmem:[%s2617_s11] ss:$0 sm:$0xff] }
 0x267   : > { %v1835_v55 = vpop.f32.mrb[15].mxu1  ;;  %v893_v56 = vsel %vm698_vm3, %v885_v52, -inf }
 0x268   : > { %894 = vmax.xlane.f32.xlu0 %v893_v56  ;;  %v1132_v56 = vld [vmem:[%s2636_s3 + $0xc] sm:$0xf] }
 0x271   : > { %646 = vrot.lane.b32.xlu1 %v2331_v12, %s2148_s12  ;;  %s2153_s12 = smov [#allocation9]  }
 0x272   : > { %s2031_s3 = sshll.u32 %s2153_s12, 4  ;;  %s2032_s3 = int_to_ptr.vmem [resolvable:$false] %s2031_s3 }
 0x27e   : > { %632 = vrot.lane.b32.xlu0 %v2331_v12, %s2624_s0  ;;  %s1608_s0 = sshll.u32 %s2393_s23, 4  ;;  %s2510_s0 = int_to_ptr.vmem [resolvable:$true] %s1608_s0 }
 0x27f   : > { %s2027_s24 = scalar_lea.vmem %s2510_s0, 256  ;;  %p2034_p1 = scmp.lt.s32.totalorder %s2510_s0, %s2032_s3 }
 0x280   : > { %p2028_p12 = scmp.ne.s32.totalorder %s2510_s0, %s2027_s24 }
 0x282   : > { %p2029_p13 = pnand %p2028_p12, %p2287_p4 }
 0x284   : > { %p2030_p0 = pneg %p2029_p13 }
 0x2e5   : > { %v889_v57 = vpop.xlane.xlu1 %888 }
 0x2e6   : > { %v899_v58 = vsub.f32 %v883_v34, %v889_v57 }
 0x2e8   : > { %v903_v59 = vmul.f32 1.442695, %v899_v58 }
 0x2ea   : > { %2007 = vpow2.f32 %v903_v59 }
 0x2ed   : > { %v898_v60 = vpop.xlane.xlu1 %897  ;;  %v892_v61 = vpop.xlane.xlu0 %891 }
 0x2ee   : > { %v902_v62 = vsub.f32 %v886_v42, %v898_v60  ;;  %v900_v63 = vsub.f32 %v884_v41, %v892_v61  ;;  %v1275_v60 = vsel %vm943_vm4, %v1132_v56, 0 }
 0x2f0   : > { %v909_v0 = vmul.f32 1.442695, %v902_v62  ;;  %v905_v1 = vmul.f32 1.442695, %v900_v63 }
 0x2f1   : > { %v647_v2 = vpop.permute.xlu1 %646 }
 0x2f2   : > { %2009 = vpow2.f32 %v909_v0  ;;  %650 = vst.msk [vmem:[#allocation4 + $0x4] sm:$0xf] %vm623_vm2, %v647_v2 }
 0x2f3   : > { %2011 = vpow2.f32 %v905_v1 }
 0x2f4   : > { %v2008_v4 = vpop.eup %2007 }
 0x2f5   : > { %v895_v6 = vpop.xlane.xlu0 %894  ;;  %v911_v7 = vsel %vm698_vm3, %v2008_v4, 0.0 }
 0x2f6   : > { %v901_v8 = vsub.f32 %v885_v52, %v895_v6  ;;  %912 = vadd.xlane.f32.xlu0 %v911_v7 }
 0x2f8   : > { %v907_v9 = vmul.f32 1.442695, %v901_v8 }
 0x2f9   : > { %v633_v10 = vpop.permute.xlu0 %632  ;;  %v695_v11 = vld [vmem:[#allocation4 + $0x4] sm:$0xf] }
 0x2fa   : > { %2013 = vpow2.f32 %v907_v9  ;;  %635 = vst.msk [vmem:[#allocation4] sm:$0xf] %vm623_vm2, %v633_v10  ;;  %v991_v13 = vsel %vm943_vm4, %v695_v11, 0  ;;  %v1997_v11 = vld [vmem:[%s2611_s5] sm:$0xff]  }
 0x2fb   : > { %1849 = vmatpush3.bf16.msra.mxu0 %v991_v13  ;;  %v1998_v13 = vld [vmem:[%s2611_s5 + $0x8] sm:$0xff]  }
 0x2fc   : > { %v2010_v14 = vpop.eup %2009  ;;  %1860 = vmatprep.subr.bf16.mxu0 %v2139_v3 }
 0x2fd   : > { %v920_v15 = vsel %vm698_vm3, %v2010_v14, 0.0  ;;  %v2012_v16 = vpop.eup %2011 }
 0x2fe   : > { %921 = vadd.xlane.f32.xlu1 %v920_v15  ;;  %v914_v17 = vsel %vm698_vm3, %v2012_v16, 0.0  ;;  %v2000_v15 = vld [vmem:[%s2613_s7 + $0x8] sm:$0xff]  }
 0x301   : > { %v694_v18 = vld [vmem:[#allocation4] sm:$0xf] }
 0x302   : > { %915 = vadd.xlane.f32.xlu1 %v914_v17  ;;  %v945_v19 = vsel %vm943_vm4, %v694_v18, 0  ;;  %v2002_v17 = vld [vmem:[%s2613_s7 + $0x18] sm:$0xff]   ;;  %v2003_v18 = vld [vmem:[%s2613_s7 + $0x20] sm:$0xff]  }
 0x303   : > { %1843 = vmatpush3.bf16.msra.mxu1 %v945_v19  ;;  %v2004_v19 = vld [vmem:[%s2613_s7 + $0x28] sm:$0xff]  }
 0x304   : > { %v2014_v20 = vpop.eup %2013  ;;  %1854 = vmatprep.subr.bf16.mxu1 %v2139_v3 }
 0x305   : > { %v917_v21 = vsel %vm698_vm3, %v2014_v20, 0.0 }
 0x306   : > { %918 = vadd.xlane.f32.xlu0 %v917_v21 }
 0x313   : > { %661 = vrot.lane.b32.xlu1 %v2331_v12, %s2150_s30 }
 0x317   : > { %1345 = vperm.xlu1 %1993, %v1743_v47   ;;  %v1744_v47 = vld [vmem:[%s2616_s10] ss:$0 sm:$0xff] }
 0x31c   : > { %676 = vrot.lane.b32.xlu0 %v2331_v12, %s2151_s17  ;;  %s2515_s17 = scalar_lea.hbm %s2621_s16, %s1770_s1 }
 0x383   : > { %v913_v22 = vpop.xlane.xlu0 %912 }
 0x384   : > { %2015 = vrcp.f32 %v913_v22 }
 0x38b   : > { %v922_v23 = vpop.xlane.xlu1 %921 }
 0x38c   : > { %2017 = vrcp.f32 %v922_v23 }
 0x38e   : > { %v2016_v24 = vpop.eup %2015 }
 0x38f   : > { %v924_v25 = vmul.f32 %v2016_v24, %v2008_v4  ;;  %v916_v26 = vpop.xlane.xlu1 %915 }
 0x390   : > { %2019 = vrcp.f32 %v916_v26 }
 0x391   : > { %v931_v27 = vpack.c.bf16 %v924_v25, %v924_v25 }
 0x393   : > { %v662_v28 = vpop.permute.xlu1 %661  ;;  %1845 = vmatmul.mubr.msk.bf16.vlgmr.msra.gmra.mrb[16].mxu1 %vm698_vm3, %v931_v27  ;;  %v919_v29 = vpop.xlane.xlu0 %918  ;;  %936 = vst.msk [vmem:[%s2393_s23] sm:$0xf] %vm623_vm2, %v931_v27 }
 0x394   : > { %665 = vst.msk [vmem:[#allocation4 + $0x8] sm:$0xf] %vm623_vm2, %v662_v28  ;;  %2021 = vrcp.f32 %v919_v29  ;;  %1856 = vmatprep.mubr.msk.bf16.mxu1 %vm2140_vm0, %v2139_v3 }
 0x396   : > { %v2018_v12 = vpop.eup %2017 }
 0x397   : > { %v930_v30 = vmul.f32 %v2018_v12, %v2010_v14  ;;  %v677_v31 = vpop.permute.xlu0 %676  ;;  %v1999_v14 = vld [vmem:[%s2613_s7] sm:$0xff]  }
 0x398   : > { %680 = vst.msk [vmem:[#allocation4 + $0xc] sm:$0xf] %vm623_vm2, %v677_v31 }
 0x399   : > { %v934_v32 = vpack.c.bf16 %v930_v30, %v930_v30 }
 0x39a   : > { %v2020_v33 = vpop.eup %2019 }
 0x39b   : > { %v926_v34 = vmul.f32 %v2020_v33, %v2012_v16  ;;  %v696_v35 = vld [vmem:[#allocation4 + $0x8] sm:$0xf]  ;;  %939 = vst.msk [vmem:[%s2393_s23 + $0xc] sm:$0xf] %vm623_vm2, %v934_v32  ;;  %v2001_v16 = vld [vmem:[%s2613_s7 + $0x10] sm:$0xff]  }
 0x39c   : > { %v1037_v36 = vsel %vm943_vm4, %v696_v35, 0 }
 0x39d   : > { %1855 = vmatpush3.bf16.msra.mxu1 %v1037_v36  ;;  %v932_v37 = vpack.c.bf16 %v926_v34, %v926_v34 }
 0x39e   : > { %v2022_v38 = vpop.eup %2021  ;;  %1866 = vmatprep.subr.bf16.mxu1 %v2139_v3 }
 0x39f   : > { %v928_v39 = vmul.f32 %v2022_v38, %v2014_v20  ;;  %1851 = vmatmul.mubr.msk.bf16.vlgmr.msra.gmra.mrb[4].mxu0 %vm698_vm3, %v932_v37  ;;  %v697_v40 = vld [vmem:[#allocation4 + $0xc] sm:$0xf]  ;;  %937 = vst.msk [vmem:[%s2393_s23 + $0x4] sm:$0xf] %vm623_vm2, %v932_v37  ;;  %v1742_v38 = vld [vmem:[%s2637_s4] ss:$0 sm:$0xff] }
 0x3a0   : > { %v1083_v41 = vsel %vm943_vm4, %v697_v40, 0  ;;  %1862 = vmatprep.mubr.msk.bf16.mxu0 %vm2140_vm0, %v2139_v3 }
 0x3a1   : > { %1861 = vmatpush3.bf16.msra.mxu0 %v1083_v41  ;;  %v933_v42 = vpack.c.bf16 %v928_v39, %v928_v39 }
 0x3a2   : > { %1872 = vmatprep.subr.bf16.mxu0 %v2139_v3 }
 0x3a3   : > { %1857 = vmatmul.mubr.msk.bf16.vlgmr.msra.gmra.mrb[20].mxu1 %vm698_vm3, %v933_v42  ;;  %938 = vst.msk [vmem:[%s2393_s23 + $0x8] sm:$0xf] %vm623_vm2, %v933_v42  ;;  %s2033_s23 = scalar_lea.vmem %s2032_s3, 512 }
 0x3a4   : > { %1868 = vmatprep.mubr.msk.bf16.mxu1 %vm2140_vm0, %v2139_v3  ;;  %1867 = vmatpush3.bf16.msra.mxu1 %v1137_v44  ;;  %v1346_v44 = vpop.permute.xlu1 %1345  ;;  %p2035_p2 = scmp.lt.s32.totalorder %s2033_s23, %s2027_s24 }
 0x3a5   : > { %1878 = vmatprep.subr.bf16.mxu1 %v2139_v3 }
 0x3a6   : > { %p2036_p3 = por %p2035_p2, %p2034_p1 }
 0x3a7   : > { %1863 = vmatmul.mubr.msk.bf16.vlgmr.msra.gmra.mrb[8].mxu0 %vm698_vm3, %v934_v32 }
 0x3a8   : > { %1874 = vmatprep.mubr.msk.bf16.mxu0 %vm2140_vm0, %v2139_v3  ;;  %1873 = vmatpush3.bf16.msra.mxu0 %v1183_v46  ;;  %p2037_p5 = pnand %p2036_p3, %p2030_p0 }
 0x3a9   : > { %1884 = vmatprep.subr.bf16.mxu0 %v2139_v3 }
 0x466   : > { %v981_v50 = vpop.f32.mrb[16].mxu1 }
 0x467   : > { %v1125_v51 = vpack.c.bf16 %v981_v50, %v981_v50  ;;  %v1846_v52 = vpop.f32.mrb[17].mxu1 }
 0x468   : > { %v984_v54 = vpop.f32.mrb[18].mxu1 }
 0x469   : > { %v1847_v55 = vpop.f32.mrb[19].mxu1  ;;  %1869 = vmatmul.mubr.msk.bf16.vlgmr.msra.gmra.mrb[24].mxu1 %vm698_vm3, %v1125_v51  ;;  %v1759_v54 = vld [vmem:[#allocation6] ss:$0 sm:$0xff] }
 0x46a   : > { %1879 = vmatpush3.bf16.msra.mxu1 %v1229_v53  ;;  %1880 = vmatprep.mubr.msk.bf16.mxu1 %vm2140_vm0, %v2139_v3  ;;  %v2006_v53 = vld [vmem:[%s2613_s7 + $0x38] sm:$0xff]   ;;  %v1746_v55 = vld [vmem:[%s2612_s6] ss:$0 sm:$0xff] }
 0x46b   : > { %1890 = vmatprep.subr.bf16.mxu1 %v2139_v3  ;;  %1554 = vperm.xlu0 %1994, %v1759_v54  }
 0x472   : > { %v1027_v57 = vpop.f32.mrb[4].mxu0 }
 0x473   : > { %v1126_v58 = vpack.c.bf16 %v1027_v57, %v1027_v57  ;;  %v1852_v59 = vpop.f32.mrb[5].mxu0 }
 0x474   : > { %v1030_v61 = vpop.f32.mrb[6].mxu0 }
 0x475   : > { %v1853_v62 = vpop.f32.mrb[7].mxu0  ;;  %1875 = vmatmul.mubr.msk.bf16.vlgmr.msra.gmra.mrb[12].mxu0 %vm698_vm3, %v1126_v58 }
 0x476   : > { %v1073_v63 = vpop.f32.mrb[20].mxu1  ;;  %1885 = vmatpush3.bf16.msra.mxu0 %v1275_v60  ;;  %1886 = vmatprep.mubr.msk.bf16.mxu0 %vm2140_vm0, %v2139_v3 }
 0x477   : > { %v1127_v0 = vpack.c.bf16 %v1073_v63, %v1073_v63  ;;  %v1858_v1 = vpop.f32.mrb[21].mxu1  ;;  %1898 = vmatprep.subr.bf16.mxu0 %v2139_v3 }
 0x478   : > { %v1076_v2 = vpop.f32.mrb[22].mxu1 }
 0x479   : > { %v1859_v4 = vpop.f32.mrb[23].mxu1  ;;  %1881 = vmatmul.mubr.msk.bf16.vlgmr.msra.gmra.mrb[28].mxu1 %vm698_vm3, %v1127_v0 }
 0x47a   : > { %v1119_v6 = vpop.f32.mrb[8].mxu0  ;;  %1894 = vmatprep.mubr.msk.bf16.mxu1 %vm2140_vm0, %v2139_v3  ;;  %1891 = vmatpush3.bf16.msra.mxu1 %v1997_v11 }
 0x47b   : > { %v1128_v7 = vpack.c.bf16 %v1119_v6, %v1119_v6  ;;  %v1864_v8 = vpop.f32.mrb[9].mxu0  ;;  %1892 = vmatprep.subr.bf16.mxu1 %v2139_v3 }
 0x47c   : > { %v1122_v9 = vpop.f32.mrb[10].mxu0 }
 0x47d   : > { %v1865_v10 = vpop.f32.mrb[11].mxu0  ;;  %1887 = vmatmul.mubr.msk.bf16.vlgmr.msra.gmra.mrb[16].mxu0 %vm698_vm3, %v1128_v7 }
 0x47e   : > { %1914 = vmatprep.mubr.msk.bf16.mxu0 %vm2140_vm0, %v2139_v3  ;;  %1893 = vmatpush3.bf16.msra.mxu1 %v1998_v13 }
 0x47f   : > { %1899 = vmatpush3.bf16.msra.mxu0 %v1999_v14 }
 0x480   : > { %1900 = vmatprep.subr.bf16.mxu0 %v2139_v3 }
 0x483   : > { %1901 = vmatpush3.bf16.msra.mxu0 %v2000_v15 }
 0x484   : > { %1902 = vmatprep.subr.bf16.mxu0 %v2139_v3 }
 0x487   : > { %1903 = vmatpush3.bf16.msra.mxu0 %v2001_v16 }
 0x488   : > { %1904 = vmatprep.subr.bf16.mxu0 %v2139_v3 }
 0x48b   : > { %1905 = vmatpush3.bf16.msra.mxu0 %v2002_v17 }
 0x48c   : > { %1906 = vmatprep.subr.bf16.mxu0 %v2139_v3 }
 0x48f   : > { %1907 = vmatpush3.bf16.msra.mxu0 %v2003_v18 }
 0x490   : > { %1908 = vmatprep.subr.bf16.mxu0 %v2139_v3 }
 0x493   : > { %1909 = vmatpush3.bf16.msra.mxu0 %v2004_v19 }
 0x494   : > { %1910 = vmatprep.subr.bf16.mxu0 %v2139_v3 }
 0x53c   : > { %v1173_v20 = vpop.f32.mrb[24].mxu1 }
 0x53d   : > { %v1870_v21 = vpop.f32.mrb[25].mxu1  ;;  %v1318_v25 = vsel %vm578_vm1, %v1173_v20, 0.0 }
 0x53e   : > { %v1176_v22 = vpop.f32.mrb[26].mxu1 }
 0x53f   : > { %v1871_v23 = vpop.f32.mrb[27].mxu1 }
 0x548   : > { %v1219_v24 = vpop.f32.mrb[12].mxu0 }
 0x549   : > { %v1319_v26 = vsel %vm578_vm1, %v1219_v24, 0.0  ;;  %v1876_v27 = vpop.f32.mrb[13].mxu0 }
 0x54a   : > { %v1320_v28 = vadd.f32 %v1319_v26, %v1318_v25  ;;  %v1222_v29 = vpop.f32.mrb[14].mxu0 }
 0x54b   : > { %v1877_v12 = vpop.f32.mrb[15].mxu0 }
 0x54c   : > { %v1265_v30 = vpop.f32.mrb[28].mxu1 }
 0x54d   : > { %v1321_v31 = vsel %vm578_vm1, %v1265_v30, 0.0  ;;  %v1882_v32 = vpop.f32.mrb[29].mxu1 }
 0x54e   : > { %v1322_v33 = vadd.f32 %v1321_v31, %v1320_v28  ;;  %v1268_v34 = vpop.f32.mrb[30].mxu1 }
 0x54f   : > { %v1883_v35 = vpop.f32.mrb[31].mxu1 }
 0x550   : > { %v1311_v36 = vpop.f32.mrb[16].mxu0 }
 0x551   : > { %v1323_v37 = vsel %vm578_vm1, %v1311_v36, 0.0  ;;  %v1888_v39 = vpop.f32.mrb[17].mxu0 }
 0x552   : > { %v1324_v40 = vadd.f32 %v1323_v37, %v1322_v33  ;;  %v1314_v41 = vpop.f32.mrb[18].mxu0 }
 0x553   : > { %v1889_v42 = vpop.f32.mrb[19].mxu0 }
 0x554   : > { %v1332_v43 = vadd.f32 %v1742_v38, %v1324_v40 }
 0x556   : > { %v1335_v45 = vadd.f32 %v1332_v43, %v2321_v5  ;;  %v2005_v5 = vld [vmem:[%s2613_s7 + $0x30] sm:$0xff]  }
 0x557   : > { %1911 = vmatpush3.bf16.msra.mxu0 %v2005_v5 }
 0x558   : > { %v1348_v46 = vmul.f32 %v1346_v44, %v1335_v45  ;;  %1912 = vmatprep.subr.bf16.mxu0 %v2139_v3 }
 0x55a   : > { %2023 = vtanh.f32 %v1348_v46 }
 0x55b   : > { %1913 = vmatpush3.bf16.msra.mxu0 %v2006_v53 }
 0x564   : > { %v2024_v48 = vpop.eup %2023 }
 0x565   : > { %v1356_v50 = vmul.f32 %v2024_v48, %v1744_v47 }
 0x567   : > { %v1363_v51 = vadd.f32 %v1745_v49, %v1356_v50 }
 0x569   : > { %v1364_v52 = vpack.c.bf16 %v1363_v51, %v1363_v51 }
 0x56b   : > { %1895 = vmatmul.mubr.msk.bf16.vlgmr.msra.gmra.mrb[32].mxu1 %vm578_vm1, %v1364_v52 }
 0x63e   : > { %v1425_v56 = vpop.f32.mrb[32].mxu1 }
 0x63f   : > { %v1426_v57 = vadd.f32 %v1746_v55, %v1425_v56  ;;  %v1896_v58 = vpop.f32.mrb[33].mxu1 }
 0x640   : > { %v1428_v59 = vpop.f32.mrb[34].mxu1 }
 0x641   : > { %v1431_v60 = vmax.f32 %v1426_v57, 0.0  ;;  %v1897_v61 = vpop.f32.mrb[35].mxu1 }
 0x643   : > { %v1432_v3 = vpack.c.bf16 %v1431_v60, %v1431_v60 }
 0x645   : > { %1915 = vmatmul.mubr.bf16.vlgmr.msra.gmra.mrb[20].mxu0 %v1432_v3 }
 0x646   : > { %2040 = shalt.err (!%p2037_p5)
}
 0x647   : > { %s2041_s1 = scalar_lea.hbm %s2515_s17, 256  ;;  %s2045_s12 = scalar_lea.hbm %s2621_s16, 512 }
 0x648   : > { %p2042_p6 = scmp.ne.s32.totalorder %s2515_s17, %s2041_s1  ;;  %p2046_p10 = scmp.lt.u32.totalorder %s2515_s17, %s2621_s16 }
 0x649   : > { %p2047_p11 = scmp.lt.u32.totalorder %s2045_s12, %s2041_s1  ;;  %p2049_p13 = scmp.lt.u32.totalorder %s2041_s1, %s2515_s17 }
 0x64a   : > { %p2043_p7 = pnand %p2042_p6, %p2287_p4 }
 0x64b   : > { %p2048_p12 = por %p2047_p11, %p2046_p10 }
 0x64c   : > { %p2044_p9 = pneg %p2043_p7 }
 0x64d   : > { %p2050_p0 = por %p2049_p13, %p2048_p12 }
 0x64f   : > { %p2051_p1 = pnand %p2050_p0, %p2044_p9 }
 0x651   : > { %2054 = shalt.err (!%p2051_p1)
}
 0x652   : > { %s2154_s24 = smov 4   ;;  %s2638_s23 = smov 64   ;;  %v1750_v62 = vld [vmem:[%s2614_s8] ss:$0 sm:$0xff]  ;;  %v1555_v4 = vpop.permute.xlu0 %1554 }
 0x653   : > { %s2639_s4 = scalar_lea.sflag [#allocation10], %s2389_s19  ;;  %s1722_s1 = sshll.u32 %s2389_s19, 3  ;;  %v1760_v9 = vld [vmem:[%s2618_s13] ss:$0 sm:$0xff] }
 0x654   : > { %1919 = dma.vmem_to_hbm [thread:$0]  (%p2287_p4), %s2510_s0, 256, %s2515_s17, %s2639_s4, %s2638_s23, %s2638_s23, %s2154_s24  }
 0x655   : > { %v1761_v11 = vld [vmem:[%s2619_s14] ss:$0 sm:$0xff]  ;;  %s1764_s17 = sshll.u32 %s2129_s28, 7  ;;  %s536_s3 = scalar_lea.vmem [#allocation7], %s1722_s1 }
 0x656   : > { %s1594_s24 = sshll.u32 %s536_s3, 4  ;;  %s2557_s2 = scalar_lea.hbm %s2620_s15, %s1764_s17  ;;  %s2559_s24 = int_to_ptr.vmem [resolvable:$true] %s1594_s24 }
 0x657   : > { %s1575_s30 = scalar_lea.sflag [#allocation8], %s2389_s19  ;;  %s2055_s12 = scalar_lea.vmem %s2559_s24, 128 }
 0x658   : > { %p2056_p2 = scmp.ne.s32.totalorder %s2559_s24, %s2055_s12  ;;  %s2155_s28 = smov [#allocation7]  }
 0x659   : > { %s2059_s1 = sshll.u32 %s2155_s28, 4  ;;  %s2060_s1 = int_to_ptr.vmem [resolvable:$false] %s2059_s1 }
 0x65a   : > { %p2057_p3 = pnand %p2056_p2, %p2287_p4  ;;  %s2061_s4 = scalar_lea.vmem %s2060_s1, 256 }
 0x65b   : > { %p2062_p6 = scmp.lt.s32.totalorder %s2559_s24, %s2060_s1  ;;  %p2063_p7 = scmp.lt.s32.totalorder %s2061_s4, %s2055_s12 }
 0x65c   : > { %p2058_p5 = pneg %p2057_p3 }
 0x65d   : > { %p2064_p9 = por %p2063_p7, %p2062_p6 }
 0x65f   : > { %p2065_p10 = pnand %p2064_p9, %p2058_p5 }
 0x718   : > { %v1538_v63 = vpop.f32.mrb[20].mxu0 }
 0x719   : > { %v1539_v0 = vadd.f32 %v1750_v62, %v1538_v63  ;;  %v1916_v1 = vpop.f32.mrb[21].mxu0 }
 0x71a   : > { %v1541_v2 = vpop.f32.mrb[22].mxu0 }
 0x71b   : > { %v1917_v6 = vpop.f32.mrb[23].mxu0  ;;  %v1544_v7 = vadd.f32 %v1539_v0, %v1363_v51 }
 0x71d   : > { %v1557_v8 = vmul.f32 %v1555_v4, %v1544_v7 }
 0x71f   : > { %2025 = vtanh.f32 %v1557_v8 }
 0x729   : > { %v2026_v10 = vpop.eup %2025 }
 0x72a   : > { %v1565_v13 = vmul.f32 %v2026_v10, %v1760_v9 }
 0x72c   : > { %v1572_v14 = vadd.f32 %v1761_v11, %v1565_v13 }
 0x72e   : > { %1573 = vst.msk [vmem:[%s536_s3] sm:$0xff] %vm578_vm1, %v1572_v14 }
 0x72f   : > { %2068 = shalt.err (!%p2065_p10)
}
 0x730   : > { %s2069_s19 = scalar_lea.hbm %s2557_s2, 128  ;;  %s2073_s3 = scalar_lea.hbm %s2620_s15, 256 }
 0x731   : > { %p2070_p11 = scmp.ne.s32.totalorder %s2557_s2, %s2069_s19  ;;  %p2074_p0 = scmp.lt.u32.totalorder %s2557_s2, %s2620_s15 }
 0x732   : > { %p2075_p1 = scmp.lt.u32.totalorder %s2073_s3, %s2069_s19  ;;  %p2077_p3 = scmp.lt.u32.totalorder %s2069_s19, %s2557_s2 }
 0x733   : > { %p2071_p12 = pnand %p2070_p11, %p2287_p4 }
 0x734   : > { %p2076_p2 = por %p2075_p1, %p2074_p0 }
 0x735   : > { %p2072_p13 = pneg %p2071_p12 }
 0x736   : > { %p2078_p5 = por %p2077_p3, %p2076_p2 }
 0x738   : > { %p2079_p6 = pnand %p2078_p5, %p2072_p13 }
 0x73a   : > { %2082 = shalt.err (!%p2079_p6)
}
 0x73b   : > { %1918 = dma.vmem_to_hbm [thread:$0]  (%p2287_p4), %s2559_s24, 128, %s2557_s2, %s1575_s30  }
 0x73c PF: > { %p1929_p7 = scmp.ge.s32.totalorder %s2137_s9, 2  ;;  %s1623_s12 = sand.u32 1, %s2117_s25  }
 0x73d   : > { %s1624_s28 = scalar_lea.sflag [#allocation8], %s1623_s12 }
 0x73e   : > { %p1923_p9 = pnand %p1929_p7, %p2294_p8 }
 0x740   : > { %2108 = dma.done.wait (!%p1923_p9), %s1624_s28, 128  }
 0x741   : > { %2110 = vsyncadd (!%p1923_p9), %s1624_s28, 4294967168  ;;  %s1633_s1 = scalar_lea.sflag [#allocation10], %s1623_s12 }
 0x742   : > { %2112 = dma.done.wait (!%p1923_p9), %s1633_s1, 256  }
 0x743   : > { %2114 = vsyncadd (!%p1923_p9), %s1633_s1, 4294967040  ;;  %s37_s9 = sadd.s32 1, %s2137_s9   ;;  %s2640_s18 = sld [smem:[#allocation13_spill]] }
 0x744   : > { %p34_p10 = scmp.ge.s32.totalorder %s37_s9, 4   ;;  %s2641_s25 = smov %s2121_s26 }
 0x745   : > { %s2642_s26 = smov %s2125_s27  ;;  %s2643_s27 = smov %s2300_s21 }
 0x746   : > { %s2644_s28 = smov %s2133_s29  ;;  %36 = sbr.rel (!%p34_p10) target bundleno = 12 (0xc), region = 147 }
 0x749   : > { %s2645_s29 = smov %s2640_s18 }
 0x74d   :  { %1638 = vsyncpa [#allocation8], 1 }
 0x74e   :  { %1640 = vsyncpa [#allocation8 + $0x1], 1 }
 0x74f   :  { %1641 = vsyncpa [#allocation10], 1 }
 0x750   :  { %1643 = vsyncpa [#allocation10 + $0x1], 1 }

</bundles_post_ra>
